<compile_context>
chip_gen: v7x
topology: tpu7x:2x2x1
jax: 0.10.0
libtpu: 0.0.40
codegen_flags: <defaults>
</compile_context>

<pallas_src>
import functools

import jax
import jax.numpy as jnp
from jax.experimental import pallas as pl
from jax.experimental.pallas import tpu as pltpu


# ------------------------------ fused kernel ------------------------------ #

def _fused_block_kernel(x_ref, w1_ref, b1_ref, w2_ref, b2_ref, *rest,
                        H, W, Cin, Cout, stride, has_shortcut, batch):
    if has_shortcut:
        ws_ref, bs_ref, out_ref, c1_ref, ypad_ref = rest
    else:
        out_ref, c1_ref, ypad_ref = rest

    f32, bf16 = jnp.float32, jnp.bfloat16
    Ho, Wo = H // stride, W // stride
    M = Ho * Wo

    # ---- zero only the 1-pixel halo borders (interiors are overwritten) ----
    if stride == 1:
        c1_ref[0:1, :, :] = jnp.zeros((1, W + 2, Cin), bf16)
        c1_ref[H + 1:H + 2, :, :] = jnp.zeros((1, W + 2, Cin), bf16)
        c1_ref[:, 0:1, :] = jnp.zeros((H + 2, 1, Cin), bf16)
        c1_ref[:, W + 1:W + 2, :] = jnp.zeros((H + 2, 1, Cin), bf16)
    else:
        # phase scratch only needs padding on its leading row / column
        c1_ref[0:1, :, :] = jnp.zeros((1, Wo + 1, 4 * Cin), bf16)
        c1_ref[:, 0:1, :] = jnp.zeros((Ho + 1, 1, 4 * Cin), bf16)
    ypad_ref[0:1, :, :] = jnp.zeros((1, Wo + 2, Cout), bf16)
    ypad_ref[Ho + 1:Ho + 2, :, :] = jnp.zeros((1, Wo + 2, Cout), bf16)
    ypad_ref[:, 0:1, :] = jnp.zeros((Ho + 2, 1, Cout), bf16)
    ypad_ref[:, Wo + 1:Wo + 2, :] = jnp.zeros((Ho + 2, 1, Cout), bf16)

    for b in range(batch):
        # -------------------- stage conv1 input + build taps --------------------
        if stride == 1:
            c1_ref[1:H + 1, 1:W + 1, :] = x_ref[b]
            taps1 = [c1_ref[kh:kh + H, kw:kw + W, :]
                     for kh in range(3) for kw in range(3)]
            x_sc = x_ref[b]                                   # (H, W, Cin)
        else:
            # x_ref[b] is a space-to-depth view: x_ref[b,i,py,j,px*Cin+c] == x[2i+py, 2j+px, c]
            # Stage it into a phase-padded scratch so every stride-2 conv tap is
            # a contiguous slice (conv1 computed directly at output resolution).
            for py in range(2):
                for px in range(2):
                    p = 2 * py + px
                    c1_ref[1:Ho + 1, 1:Wo + 1, p * Cin:(p + 1) * Cin] = (
                        x_ref[b, :, py, :, px * Cin:(px + 1) * Cin])

            def tap(kh, kw):
                # tap value at (y, x) must be x[2y + kh - 1, 2x + kw - 1] (0-padded)
                py, r0 = (kh + 1) % 2, min(kh, 1)
                px, c0 = (kw + 1) % 2, min(kw, 1)
                p = 2 * py + px
                return c1_ref[r0:r0 + Ho, c0:c0 + Wo, p * Cin:(p + 1) * Cin]

            taps1 = [tap(kh, kw) for kh in range(3) for kw in range(3)]
            x_sc = x_ref[b, :, 0, :, 0:Cin]                   # x[::2, ::2, :]

        # -------------------- conv1 (+ folded bn1) + ReLU -----------------------
        patches1 = jnp.concatenate(taps1, axis=-1).reshape(M, 9 * Cin)
        out1 = jnp.dot(patches1, w1_ref[...], preferred_element_type=f32)
        out1 = jnp.maximum(out1 + b1_ref[...], 0.0)

        # -------------------- conv2 (+ folded bn2) ------------------------------
        ypad_ref[1:Ho + 1, 1:Wo + 1, :] = out1.reshape(Ho, Wo, Cout).astype(bf16)
        taps2 = [ypad_ref[kh:kh + Ho, kw:kw + Wo, :]
                 for kh in range(3) for kw in range(3)]
        patches2 = jnp.concatenate(taps2, axis=-1).reshape(M, 9 * Cout)
        out2 = jnp.dot(patches2, w2_ref[...], preferred_element_type=f32) + b2_ref[...]

        # -------------------- shortcut (straight from x_ref) --------------------
        if has_shortcut:
            xs = x_sc.reshape(M, Cin)
            res = jnp.dot(xs, ws_ref[...], preferred_element_type=f32) + bs_ref[...]
        else:
            res = x_sc.reshape(M, Cin).astype(f32)            # Cin == Cout here

        out = jnp.maximum(out2 + res, 0.0)                    # (M, Cout) f32
        # lane-dense, NCHW-ordered write: (M, Cout) -> (Cout, M)
        out_ref[b] = jnp.transpose(out).astype(bf16)


# --------------------------- pallas_call wrapper --------------------------- #

def basic_block_forward(x_nchw, params, stride, batch_tile=1):
    N, Cin, H, W = x_nchw.shape
    Cout = params["b1"].shape[-1]
    assert stride in (1, 2)
    assert N % batch_tile == 0
    Ho, Wo = H // stride, W // stride
    M = Ho * Wo
    has_shortcut = params["has_shortcut"]

    # NCHW -> NHWC (channels on lanes), bf16 for the MXU.
    x = jnp.transpose(x_nchw, (0, 2, 3, 1)).astype(jnp.bfloat16)
    if stride != 1:
        assert H % 2 == 0 and W % 2 == 0
        # Free (metadata-only) space-to-depth view used by the stride-2 path.
        x_in = x.reshape(N, Ho, 2, Wo, 2 * Cin)
        x_spec = pl.BlockSpec((batch_tile, Ho, 2, Wo, 2 * Cin),
                              lambda n: (n, 0, 0, 0, 0))
        c1_scratch = (Ho + 1, Wo + 1, 4 * Cin)
    else:
        x_in = x
        x_spec = pl.BlockSpec((batch_tile, H, W, Cin), lambda n: (n, 0, 0, 0))
        c1_scratch = (H + 2, W + 2, Cin)

    # Fold BN scale into bf16 conv weights; flatten 3x3 kernels to (9*Cin, Cout).
    def fold(w_hwio, scale):
        co = w_hwio.shape[-1]
        return (w_hwio * scale).reshape(-1, co).astype(jnp.bfloat16)

    w1 = fold(params["w1"], params["s1"])
    w2 = fold(params["w2"], params["s2"])
    b1 = params["b1"].reshape(1, Cout).astype(jnp.float32)
    b2 = params["b2"].reshape(1, Cout).astype(jnp.float32)

    inputs = [x_in, w1, b1, w2, b2]
    in_specs = [
        x_spec,
        pl.BlockSpec(w1.shape, lambda n: (0, 0)),
        pl.BlockSpec((1, Cout), lambda n: (0, 0)),
        pl.BlockSpec(w2.shape, lambda n: (0, 0)),
        pl.BlockSpec((1, Cout), lambda n: (0, 0)),
    ]
    if has_shortcut:
        ws = (params["ws"][0, 0] * params["ss"]).astype(jnp.bfloat16)  # (Cin, Cout)
        bs = params["bs"].reshape(1, Cout).astype(jnp.float32)
        inputs += [ws, bs]
        in_specs += [pl.BlockSpec((Cin, Cout), lambda n: (0, 0)),
                     pl.BlockSpec((1, Cout), lambda n: (0, 0))]

    kern = functools.partial(_fused_block_kernel, H=H, W=W, Cin=Cin, Cout=Cout,
                             stride=stride, has_shortcut=has_shortcut,
                             batch=batch_tile)

    out = pl.pallas_call(
        kern,
        out_shape=jax.ShapeDtypeStruct((N, Cout, M), jnp.bfloat16),
        grid=(N // batch_tile,),
        in_specs=in_specs,
        out_specs=pl.BlockSpec((batch_tile, Cout, M), lambda n: (n, 0, 0)),
        scratch_shapes=[
            pltpu.VMEM(c1_scratch, jnp.bfloat16),             # conv1 staging
            pltpu.VMEM((Ho + 2, Wo + 2, Cout), jnp.bfloat16),  # conv2 staging
        ],
        compiler_params=pltpu.CompilerParams(
            dimension_semantics=("parallel",),
            vmem_limit_bytes=32 * 1024 * 1024),
    )(*inputs)
    # Output is already NCHW-ordered (Cout major, pixels minor): reshape is free.
    return out.reshape(N, Cout, Ho, Wo)


# ------------------------------- parameters -------------------------------- #

def _fold_bn(gamma, beta, mean, var, eps=1e-5):
    scale = gamma / jnp.sqrt(var + eps)
    return scale, beta - mean * scale


def init_basic_block_params(key, in_channels, out_channels, stride):
    ks = jax.random.split(key, 16)

    def conv_w(k, cout, cin, kh, kw):
        w = jax.random.normal(k, (cout, cin, kh, kw), jnp.float32) * 0.1
        return jnp.transpose(w, (2, 3, 1, 0))                  # OIHW -> HWIO (f32)

    def bn(k0, k1, k2, k3, c):
        gamma = 0.5 + jax.random.uniform(k0, (c,), jnp.float32)
        beta = 0.1 * jax.random.normal(k1, (c,), jnp.float32)
        mean = 0.1 * jax.random.normal(k2, (c,), jnp.float32)
        var = 0.5 + jax.random.uniform(k3, (c,), jnp.float32)
        return _fold_bn(gamma, beta, mean, var)

    p = {}
    p["w1"] = conv_w(ks[0], out_channels, in_channels, 3, 3)
    p["s1"], p["b1"] = bn(ks[1], ks[2], ks[3], ks[4], out_channels)
    p["w2"] = conv_w(ks[5], out_channels, out_channels, 3, 3)
    p["s2"], p["b2"] = bn(ks[6], ks[7], ks[8], ks[9], out_channels)
    p["has_shortcut"] = (stride != 1) or (in_channels != out_channels)
    if p["has_shortcut"]:
        p["ws"] = conv_w(ks[10], out_channels, in_channels, 1, 1)  # (1,1,Cin,Cout)
        p["ss"], p["bs"] = bn(ks[11], ks[12], ks[13], ks[14], out_channels)
    return p


# --------------------------- pure-JAX reference ---------------------------- #

def _ref_conv(x_nhwc, w_hwio, stride, pad):
    return jax.lax.conv_general_dilated(
        x_nhwc, w_hwio, window_strides=(stride, stride),
        padding=((pad, pad), (pad, pad)),
        dimension_numbers=("NHWC", "HWIO", "NHWC"),
        precision=jax.lax.Precision.HIGHEST)


def ref_basic_block(x_nchw, params, stride):
    # f32 math on the same bf16-rounded input the kernel consumes.
    x = jnp.transpose(x_nchw, (0, 2, 3, 1)).astype(jnp.bfloat16).astype(jnp.float32)
    out = _ref_conv(x, params["w1"], stride, 1) * params["s1"] + params["b1"]
    out = jnp.maximum(out, 0.0)
    out = _ref_conv(out, params["w2"], 1, 1) * params["s2"] + params["b2"]
    if params["has_shortcut"]:
        sc = _ref_conv(x, params["ws"], stride, 0) * params["ss"] + params["bs"]
    else:
        sc = x
    out = jnp.maximum(out + sc, 0.0)
    return jnp.transpose(out, (0, 3, 1, 2))


# --------------------------------- main ------------------------------------ #

if __name__ == "__main__":
    key = jax.random.PRNGKey(0)
    kx, kp, kx2, kp2 = jax.random.split(key, 4)

    # Downsampling block: stride 2 + 1x1 projection shortcut.
    N, Cin, H, W = 2, 4, 16, 16
    Cout, stride = 8, 2
    x = jax.random.normal(kx, (N, Cin, H, W), jnp.float32)     # NCHW like PyTorch
    params = init_basic_block_params(kp, Cin, Cout, stride)

    y = jax.block_until_ready(basic_block_forward(x, params, stride))
    y_ref = ref_basic_block(x, params, stride)
    assert y.shape == (N, Cout, H // 2, W // 2), y.shape
    err = float(jnp.max(jnp.abs(y.astype(jnp.float32) - y_ref)))
    assert jnp.allclose(y.astype(jnp.float32), y_ref, atol=2e-2, rtol=2e-2), err

    # Identity-shortcut block: stride 1, Cin == Cout.  batch_tile=2 folds both
    # images into a single grid step (v5e/v6e single-TC path).
    C2 = 8
    x2 = jax.random.normal(kx2, (N, C2, H, W), jnp.float32)
    params2 = init_basic_block_params(kp2, C2, C2, 1)
    y2 = jax.block_until_ready(basic_block_forward(x2, params2, 1, batch_tile=2))
    y2_ref = ref_basic_block(x2, params2, 1)
    assert y2.shape == (N, C2, H, W), y2.shape
    err2 = float(jnp.max(jnp.abs(y2.astype(jnp.float32) - y2_ref)))
    assert jnp.allclose(y2.astype(jnp.float32), y2_ref, atol=2e-2, rtol=2e-2), err2

    print("KERNEL_OK")
</pallas_src>

<mosaic_0001>
module attributes {stable_mosaic.version = 11 : i64} {
  func.func @_fused_block_kernel(%arg0: i32, %arg1: memref<1x8x2x8x8xbf16, #tpu.memory_space<vmem>>, %arg2: memref<36x8xbf16, #tpu.memory_space<vmem>>, %arg3: memref<1x8xf32, #tpu.memory_space<vmem>>, %arg4: memref<72x8xbf16, #tpu.memory_space<vmem>>, %arg5: memref<1x8xf32, #tpu.memory_space<vmem>>, %arg6: memref<4x8xbf16, #tpu.memory_space<vmem>>, %arg7: memref<1x8xf32, #tpu.memory_space<vmem>>, %arg8: memref<1x8x64xbf16, #tpu.memory_space<vmem>>, %arg9: memref<9x9x16xbf16, #tpu.memory_space<vmem>>, %arg10: memref<10x10x8xbf16, #tpu.memory_space<vmem>>) attributes {dimension_semantics = [#tpu.dimension_semantics<parallel>], iteration_bounds = array<i64: 2>, scalar_prefetch = 0 : i64, scratch_operands = 2 : i64, tpu.core_type = #tpu.core_type<tc>, window_params = [{transform_indices = @transform_0, window_bounds = array<i64: 1, 8, 2, 8, 8>}, {pipeline_mode = #tpu.pipeline_mode<synchronous>, transform_indices = @transform_1, window_bounds = array<i64: 36, 8>}, {pipeline_mode = #tpu.pipeline_mode<synchronous>, transform_indices = @transform_2, window_bounds = array<i64: 1, 8>}, {pipeline_mode = #tpu.pipeline_mode<synchronous>, transform_indices = @transform_3, window_bounds = array<i64: 72, 8>}, {pipeline_mode = #tpu.pipeline_mode<synchronous>, transform_indices = @transform_4, window_bounds = array<i64: 1, 8>}, {pipeline_mode = #tpu.pipeline_mode<synchronous>, transform_indices = @transform_5, window_bounds = array<i64: 4, 8>}, {pipeline_mode = #tpu.pipeline_mode<synchronous>, transform_indices = @transform_6, window_bounds = array<i64: 1, 8>}, {transform_indices = @transform_7, window_bounds = array<i64: 1, 8, 64>}]} {
    %cst = arith.constant 0.000000e+00 : bf16
    %0 = vector.broadcast %cst : bf16 to vector<1x9x16xbf16>
    %c0 = arith.constant 0 : index
    %c0_0 = arith.constant 0 : index
    %c0_1 = arith.constant 0 : index
    %1 = vector.load %arg9[%c0, %c0_0, %c0_1] : memref<9x9x16xbf16, #tpu.memory_space<vmem>>, vector<1x9x16xbf16>
    tpu.vector_store %arg9[%c0, %c0_0, %c0_1], %0 {strides = array<i32>} : memref<9x9x16xbf16, #tpu.memory_space<vmem>>, vector<1x9x16xbf16>,
    %cst_2 = arith.constant 0.000000e+00 : bf16
    %2 = vector.broadcast %cst_2 : bf16 to vector<9x1x16xbf16>
    %c0_3 = arith.constant 0 : index
    %c0_4 = arith.constant 0 : index
    %c0_5 = arith.constant 0 : index
    %3 = vector.load %arg9[%c0_3, %c0_4, %c0_5] : memref<9x9x16xbf16, #tpu.memory_space<vmem>>, vector<9x1x16xbf16>
    tpu.vector_store %arg9[%c0_3, %c0_4, %c0_5], %2 {strides = array<i32>} : memref<9x9x16xbf16, #tpu.memory_space<vmem>>, vector<9x1x16xbf16>,
    %cst_6 = arith.constant 0.000000e+00 : bf16
    %4 = vector.broadcast %cst_6 : bf16 to vector<1x10x8xbf16>
    %c0_7 = arith.constant 0 : index
    %c0_8 = arith.constant 0 : index
    %c0_9 = arith.constant 0 : index
    %5 = vector.load %arg10[%c0_7, %c0_8, %c0_9] : memref<10x10x8xbf16, #tpu.memory_space<vmem>>, vector<1x10x8xbf16>
    tpu.vector_store %arg10[%c0_7, %c0_8, %c0_9], %4 {strides = array<i32>} : memref<10x10x8xbf16, #tpu.memory_space<vmem>>, vector<1x10x8xbf16>,
    %cst_10 = arith.constant 0.000000e+00 : bf16
    %6 = vector.broadcast %cst_10 : bf16 to vector<1x10x8xbf16>
    %c9 = arith.constant 9 : index
    %c0_11 = arith.constant 0 : index
    %c0_12 = arith.constant 0 : index
    %7 = vector.load %arg10[%c9, %c0_11, %c0_12] : memref<10x10x8xbf16, #tpu.memory_space<vmem>>, vector<1x10x8xbf16>
    tpu.vector_store %arg10[%c9, %c0_11, %c0_12], %6 {strides = array<i32>} : memref<10x10x8xbf16, #tpu.memory_space<vmem>>, vector<1x10x8xbf16>,
    %cst_13 = arith.constant 0.000000e+00 : bf16
    %8 = vector.broadcast %cst_13 : bf16 to vector<10x1x8xbf16>
    %c0_14 = arith.constant 0 : index
    %c0_15 = arith.constant 0 : index
    %c0_16 = arith.constant 0 : index
    %9 = vector.load %arg10[%c0_14, %c0_15, %c0_16] : memref<10x10x8xbf16, #tpu.memory_space<vmem>>, vector<10x1x8xbf16>
    tpu.vector_store %arg10[%c0_14, %c0_15, %c0_16], %8 {strides = array<i32>} : memref<10x10x8xbf16, #tpu.memory_space<vmem>>, vector<10x1x8xbf16>,
    %cst_17 = arith.constant 0.000000e+00 : bf16
    %10 = vector.broadcast %cst_17 : bf16 to vector<10x1x8xbf16>
    %c0_18 = arith.constant 0 : index
    %c9_19 = arith.constant 9 : index
    %c0_20 = arith.constant 0 : index
    %11 = vector.load %arg10[%c0_18, %c9_19, %c0_20] : memref<10x10x8xbf16, #tpu.memory_space<vmem>>, vector<10x1x8xbf16>
    tpu.vector_store %arg10[%c0_18, %c9_19, %c0_20], %10 {strides = array<i32>} : memref<10x10x8xbf16, #tpu.memory_space<vmem>>, vector<10x1x8xbf16>,
    %c0_21 = arith.constant 0 : index
    %c0_22 = arith.constant 0 : index
    %c0_23 = arith.constant 0 : index
    %c0_24 = arith.constant 0 : index
    %c0_25 = arith.constant 0 : index
    %12 = vector.load %arg1[%c0_21, %c0_22, %c0_23, %c0_24, %c0_25] : memref<1x8x2x8x8xbf16, #tpu.memory_space<vmem>>, vector<1x8x1x8x4xbf16>
    %13 = vector.shape_cast %12 : vector<1x8x1x8x4xbf16> to vector<8x8x4xbf16>
    %c1 = arith.constant 1 : index
    %c1_26 = arith.constant 1 : index
    %c0_27 = arith.constant 0 : index
    %14 = vector.load %arg9[%c1, %c1_26, %c0_27] : memref<9x9x16xbf16, #tpu.memory_space<vmem>>, vector<8x8x4xbf16>
    tpu.vector_store %arg9[%c1, %c1_26, %c0_27], %13 {strides = array<i32>} : memref<9x9x16xbf16, #tpu.memory_space<vmem>>, vector<8x8x4xbf16>,
    %c0_28 = arith.constant 0 : index
    %c0_29 = arith.constant 0 : index
    %c0_30 = arith.constant 0 : index
    %c0_31 = arith.constant 0 : index
    %c4 = arith.constant 4 : index
    %15 = vector.load %arg1[%c0_28, %c0_29, %c0_30, %c0_31, %c4] : memref<1x8x2x8x8xbf16, #tpu.memory_space<vmem>>, vector<1x8x1x8x4xbf16>
    %16 = vector.shape_cast %15 : vector<1x8x1x8x4xbf16> to vector<8x8x4xbf16>
    %c1_32 = arith.constant 1 : index
    %c1_33 = arith.constant 1 : index
    %c4_34 = arith.constant 4 : index
    %17 = vector.load %arg9[%c1_32, %c1_33, %c4_34] : memref<9x9x16xbf16, #tpu.memory_space<vmem>>, vector<8x8x4xbf16>
    tpu.vector_store %arg9[%c1_32, %c1_33, %c4_34], %16 {strides = array<i32>} : memref<9x9x16xbf16, #tpu.memory_space<vmem>>, vector<8x8x4xbf16>,
    %c0_35 = arith.constant 0 : index
    %c0_36 = arith.constant 0 : index
    %c1_37 = arith.constant 1 : index
    %c0_38 = arith.constant 0 : index
    %c0_39 = arith.constant 0 : index
    %18 = vector.load %arg1[%c0_35, %c0_36, %c1_37, %c0_38, %c0_39] : memref<1x8x2x8x8xbf16, #tpu.memory_space<vmem>>, vector<1x8x1x8x4xbf16>
    %19 = vector.shape_cast %18 : vector<1x8x1x8x4xbf16> to vector<8x8x4xbf16>
    %c1_40 = arith.constant 1 : index
    %c1_41 = arith.constant 1 : index
    %c8 = arith.constant 8 : index
    %20 = vector.load %arg9[%c1_40, %c1_41, %c8] : memref<9x9x16xbf16, #tpu.memory_space<vmem>>, vector<8x8x4xbf16>
    tpu.vector_store %arg9[%c1_40, %c1_41, %c8], %19 {strides = array<i32>} : memref<9x9x16xbf16, #tpu.memory_space<vmem>>, vector<8x8x4xbf16>,
    %c0_42 = arith.constant 0 : index
    %c0_43 = arith.constant 0 : index
    %c1_44 = arith.constant 1 : index
    %c0_45 = arith.constant 0 : index
    %c4_46 = arith.constant 4 : index
    %21 = vector.load %arg1[%c0_42, %c0_43, %c1_44, %c0_45, %c4_46] : memref<1x8x2x8x8xbf16, #tpu.memory_space<vmem>>, vector<1x8x1x8x4xbf16>
    %22 = vector.shape_cast %21 : vector<1x8x1x8x4xbf16> to vector<8x8x4xbf16>
    %c1_47 = arith.constant 1 : index
    %c1_48 = arith.constant 1 : index
    %c12 = arith.constant 12 : index
    %23 = vector.load %arg9[%c1_47, %c1_48, %c12] : memref<9x9x16xbf16, #tpu.memory_space<vmem>>, vector<8x8x4xbf16>
    tpu.vector_store %arg9[%c1_47, %c1_48, %c12], %22 {strides = array<i32>} : memref<9x9x16xbf16, #tpu.memory_space<vmem>>, vector<8x8x4xbf16>,
    %c0_49 = arith.constant 0 : index
    %c0_50 = arith.constant 0 : index
    %c12_51 = arith.constant 12 : index
    %24 = vector.load %arg9[%c0_49, %c0_50, %c12_51] : memref<9x9x16xbf16, #tpu.memory_space<vmem>>, vector<8x8x4xbf16>
    %c0_52 = arith.constant 0 : index
    %c1_53 = arith.constant 1 : index
    %c8_54 = arith.constant 8 : index
    %25 = vector.load %arg9[%c0_52, %c1_53, %c8_54] : memref<9x9x16xbf16, #tpu.memory_space<vmem>>, vector<8x8x4xbf16>
    %c0_55 = arith.constant 0 : index
    %c1_56 = arith.constant 1 : index
    %c12_57 = arith.constant 12 : index
    %26 = vector.load %arg9[%c0_55, %c1_56, %c12_57] : memref<9x9x16xbf16, #tpu.memory_space<vmem>>, vector<8x8x4xbf16>
    %c1_58 = arith.constant 1 : index
    %c0_59 = arith.constant 0 : index
    %c4_60 = arith.constant 4 : index
    %27 = vector.load %arg9[%c1_58, %c0_59, %c4_60] : memref<9x9x16xbf16, #tpu.memory_space<vmem>>, vector<8x8x4xbf16>
    %c1_61 = arith.constant 1 : index
    %c1_62 = arith.constant 1 : index
    %c0_63 = arith.constant 0 : index
    %28 = vector.load %arg9[%c1_61, %c1_62, %c0_63] : memref<9x9x16xbf16, #tpu.memory_space<vmem>>, vector<8x8x4xbf16>
    %c1_64 = arith.constant 1 : index
    %c1_65 = arith.constant 1 : index
    %c4_66 = arith.constant 4 : index
    %29 = vector.load %arg9[%c1_64, %c1_65, %c4_66] : memref<9x9x16xbf16, #tpu.memory_space<vmem>>, vector<8x8x4xbf16>
    %c1_67 = arith.constant 1 : index
    %c0_68 = arith.constant 0 : index
    %c12_69 = arith.constant 12 : index
    %30 = vector.load %arg9[%c1_67, %c0_68, %c12_69] : memref<9x9x16xbf16, #tpu.memory_space<vmem>>, vector<8x8x4xbf16>
    %c1_70 = arith.constant 1 : index
    %c1_71 = arith.constant 1 : index
    %c8_72 = arith.constant 8 : index
    %31 = vector.load %arg9[%c1_70, %c1_71, %c8_72] : memref<9x9x16xbf16, #tpu.memory_space<vmem>>, vector<8x8x4xbf16>
    %c1_73 = arith.constant 1 : index
    %c1_74 = arith.constant 1 : index
    %c12_75 = arith.constant 12 : index
    %32 = vector.load %arg9[%c1_73, %c1_74, %c12_75] : memref<9x9x16xbf16, #tpu.memory_space<vmem>>, vector<8x8x4xbf16>
    %c0_76 = arith.constant 0 : index
    %c0_77 = arith.constant 0 : index
    %c0_78 = arith.constant 0 : index
    %c0_79 = arith.constant 0 : index
    %c0_80 = arith.constant 0 : index
    %33 = vector.load %arg1[%c0_76, %c0_77, %c0_78, %c0_79, %c0_80] : memref<1x8x2x8x8xbf16, #tpu.memory_space<vmem>>, vector<1x8x1x8x4xbf16>
    %34 = vector.shape_cast %33 : vector<1x8x1x8x4xbf16> to vector<8x8x4xbf16>
    %35 = tpu.concatenate %24, %25, %26, %27, %28, %29, %30, %31, %32 in 2 : vector<8x8x4xbf16>, vector<8x8x4xbf16>, vector<8x8x4xbf16>, vector<8x8x4xbf16>, vector<8x8x4xbf16>, vector<8x8x4xbf16>, vector<8x8x4xbf16>, vector<8x8x4xbf16>, vector<8x8x4xbf16> -> vector<8x8x36xbf16>
    %36 = vector.shape_cast %35 : vector<8x8x36xbf16> to vector<64x36xbf16>
    %c0_81 = arith.constant 0 : index
    %c0_82 = arith.constant 0 : index
    %37 = vector.load %arg2[%c0_81, %c0_82] : memref<36x8xbf16, #tpu.memory_space<vmem>>, vector<36x8xbf16>
    %cst_83 = arith.constant dense<0.000000e+00> : vector<64x8xf32>
    %38 = tpu.matmul %36, %37, %cst_83 {dimension_numbers = #tpu.dot_dimension_numbers<[1], [0], [0], [1], [0, 0, 1, 1], [], []>} : vector<64x36xbf16>, vector<36x8xbf16>, vector<64x8xf32> -> vector<64x8xf32>
    %c0_84 = arith.constant 0 : index
    %c0_85 = arith.constant 0 : index
    %39 = vector.load %arg3[%c0_84, %c0_85] : memref<1x8xf32, #tpu.memory_space<vmem>>, vector<1x8xf32>
    %40 = vector.broadcast %39 : vector<1x8xf32> to vector<64x8xf32>
    %41 = arith.addf %38, %40 : vector<64x8xf32>
    %cst_86 = arith.constant 0.000000e+00 : f32
    %42 = vector.broadcast %cst_86 : f32 to vector<64x8xf32>
    %43 = arith.maximumf %41, %42 : vector<64x8xf32>
    %44 = vector.shape_cast %43 : vector<64x8xf32> to vector<8x8x8xf32>
    %45 = arith.truncf %44 : vector<8x8x8xf32> to vector<8x8x8xbf16>
    %c1_87 = arith.constant 1 : index
    %c1_88 = arith.constant 1 : index
    %c0_89 = arith.constant 0 : index
    %46 = vector.load %arg10[%c1_87, %c1_88, %c0_89] : memref<10x10x8xbf16, #tpu.memory_space<vmem>>, vector<8x8x8xbf16>
    tpu.vector_store %arg10[%c1_87, %c1_88, %c0_89], %45 {strides = array<i32>} : memref<10x10x8xbf16, #tpu.memory_space<vmem>>, vector<8x8x8xbf16>,
    %c0_90 = arith.constant 0 : index
    %c0_91 = arith.constant 0 : index
    %c0_92 = arith.constant 0 : index
    %47 = vector.load %arg10[%c0_90, %c0_91, %c0_92] : memref<10x10x8xbf16, #tpu.memory_space<vmem>>, vector<8x8x8xbf16>
    %c0_93 = arith.constant 0 : index
    %c1_94 = arith.constant 1 : index
    %c0_95 = arith.constant 0 : index
    %48 = vector.load %arg10[%c0_93, %c1_94, %c0_95] : memref<10x10x8xbf16, #tpu.memory_space<vmem>>, vector<8x8x8xbf16>
    %c0_96 = arith.constant 0 : index
    %c2 = arith.constant 2 : index
    %c0_97 = arith.constant 0 : index
    %49 = vector.load %arg10[%c0_96, %c2, %c0_97] : memref<10x10x8xbf16, #tpu.memory_space<vmem>>, vector<8x8x8xbf16>
    %c1_98 = arith.constant 1 : index
    %c0_99 = arith.constant 0 : index
    %c0_100 = arith.constant 0 : index
    %50 = vector.load %arg10[%c1_98, %c0_99, %c0_100] : memref<10x10x8xbf16, #tpu.memory_space<vmem>>, vector<8x8x8xbf16>
    %c1_101 = arith.constant 1 : index
    %c1_102 = arith.constant 1 : index
    %c0_103 = arith.constant 0 : index
    %51 = vector.load %arg10[%c1_101, %c1_102, %c0_103] : memref<10x10x8xbf16, #tpu.memory_space<vmem>>, vector<8x8x8xbf16>
    %c1_104 = arith.constant 1 : index
    %c2_105 = arith.constant 2 : index
    %c0_106 = arith.constant 0 : index
    %52 = vector.load %arg10[%c1_104, %c2_105, %c0_106] : memref<10x10x8xbf16, #tpu.memory_space<vmem>>, vector<8x8x8xbf16>
    %c2_107 = arith.constant 2 : index
    %c0_108 = arith.constant 0 : index
    %c0_109 = arith.constant 0 : index
    %53 = vector.load %arg10[%c2_107, %c0_108, %c0_109] : memref<10x10x8xbf16, #tpu.memory_space<vmem>>, vector<8x8x8xbf16>
    %c2_110 = arith.constant 2 : index
    %c1_111 = arith.constant 1 : index
    %c0_112 = arith.constant 0 : index
    %54 = vector.load %arg10[%c2_110, %c1_111, %c0_112] : memref<10x10x8xbf16, #tpu.memory_space<vmem>>, vector<8x8x8xbf16>
    %c2_113 = arith.constant 2 : index
    %c2_114 = arith.constant 2 : index
    %c0_115 = arith.constant 0 : index
    %55 = vector.load %arg10[%c2_113, %c2_114, %c0_115] : memref<10x10x8xbf16, #tpu.memory_space<vmem>>, vector<8x8x8xbf16>
    %56 = tpu.concatenate %47, %48, %49, %50, %51, %52, %53, %54, %55 in 2 : vector<8x8x8xbf16>, vector<8x8x8xbf16>, vector<8x8x8xbf16>, vector<8x8x8xbf16>, vector<8x8x8xbf16>, vector<8x8x8xbf16>, vector<8x8x8xbf16>, vector<8x8x8xbf16>, vector<8x8x8xbf16> -> vector<8x8x72xbf16>
    %57 = vector.shape_cast %56 : vector<8x8x72xbf16> to vector<64x72xbf16>
    %c0_116 = arith.constant 0 : index
    %c0_117 = arith.constant 0 : index
    %58 = vector.load %arg4[%c0_116, %c0_117] : memref<72x8xbf16, #tpu.memory_space<vmem>>, vector<72x8xbf16>
    %cst_118 = arith.constant dense<0.000000e+00> : vector<64x8xf32>
    %59 = tpu.matmul %57, %58, %cst_118 {dimension_numbers = #tpu.dot_dimension_numbers<[1], [0], [0], [1], [0, 0, 1, 1], [], []>} : vector<64x72xbf16>, vector<72x8xbf16>, vector<64x8xf32> -> vector<64x8xf32>
    %c0_119 = arith.constant 0 : index
    %c0_120 = arith.constant 0 : index
    %60 = vector.load %arg5[%c0_119, %c0_120] : memref<1x8xf32, #tpu.memory_space<vmem>>, vector<1x8xf32>
    %61 = vector.broadcast %60 : vector<1x8xf32> to vector<64x8xf32>
    %62 = arith.addf %59, %61 : vector<64x8xf32>
    %63 = vector.shape_cast %34 : vector<8x8x4xbf16> to vector<64x4xbf16>
    %c0_121 = arith.constant 0 : index
    %c0_122 = arith.constant 0 : index
    %64 = vector.load %arg6[%c0_121, %c0_122] : memref<4x8xbf16, #tpu.memory_space<vmem>>, vector<4x8xbf16>
    %cst_123 = arith.constant dense<0.000000e+00> : vector<64x8xf32>
    %65 = tpu.matmul %63, %64, %cst_123 {dimension_numbers = #tpu.dot_dimension_numbers<[1], [0], [0], [1], [0, 0, 1, 1], [], []>} : vector<64x4xbf16>, vector<4x8xbf16>, vector<64x8xf32> -> vector<64x8xf32>
    %c0_124 = arith.constant 0 : index
    %c0_125 = arith.constant 0 : index
    %66 = vector.load %arg7[%c0_124, %c0_125] : memref<1x8xf32, #tpu.memory_space<vmem>>, vector<1x8xf32>
    %67 = vector.broadcast %66 : vector<1x8xf32> to vector<64x8xf32>
    %68 = arith.addf %65, %67 : vector<64x8xf32>
    %69 = arith.addf %62, %68 : vector<64x8xf32>
    %cst_126 = arith.constant 0.000000e+00 : f32
    %70 = vector.broadcast %cst_126 : f32 to vector<64x8xf32>
    %71 = arith.maximumf %69, %70 : vector<64x8xf32>
    %72 = tpu.transpose %71, [1, 0] : vector<64x8xf32> -> vector<8x64xf32>
    %73 = arith.truncf %72 : vector<8x64xf32> to vector<8x64xbf16>
    %c0_127 = arith.constant 0 : index
    %c0_128 = arith.constant 0 : index
    %c0_129 = arith.constant 0 : index
    %74 = vector.load %arg8[%c0_127, %c0_128, %c0_129] : memref<1x8x64xbf16, #tpu.memory_space<vmem>>, vector<1x8x64xbf16>
    %75 = vector.shape_cast %74 : vector<1x8x64xbf16> to vector<8x64xbf16>
    %76 = vector.shape_cast %73 : vector<8x64xbf16> to vector<1x8x64xbf16>
    tpu.vector_store %arg8[%c0_127, %c0_128, %c0_129], %76 {strides = array<i32>} : memref<1x8x64xbf16, #tpu.memory_space<vmem>>, vector<1x8x64xbf16>,
    return
  }
  func.func @transform_0(%arg0: i32) -> (i32, i32, i32, i32, i32) {
    %c0_i32 = arith.constant 0 : i32
    %c0_i32_0 = arith.constant 0 : i32
    %c0_i32_1 = arith.constant 0 : i32
    %c0_i32_2 = arith.constant 0 : i32
    %c0_i32_3 = arith.constant 0 : i32
    return %arg0, %c0_i32, %c0_i32_0, %c0_i32_1, %c0_i32_2 : i32, i32, i32, i32, i32
  }
  func.func @transform_1(%arg0: i32) -> (i32, i32) {
    %c0_i32 = arith.constant 0 : i32
    %c0_i32_0 = arith.constant 0 : i32
    %c0_i32_1 = arith.constant 0 : i32
    return %c0_i32, %c0_i32_0 : i32, i32
  }
  func.func @transform_2(%arg0: i32) -> (i32, i32) {
    %c0_i32 = arith.constant 0 : i32
    %c0_i32_0 = arith.constant 0 : i32
    %c0_i32_1 = arith.constant 0 : i32
    return %c0_i32, %c0_i32_0 : i32, i32
  }
  func.func @transform_3(%arg0: i32) -> (i32, i32) {
    %c0_i32 = arith.constant 0 : i32
    %c0_i32_0 = arith.constant 0 : i32
    %c0_i32_1 = arith.constant 0 : i32
    return %c0_i32, %c0_i32_0 : i32, i32
  }
  func.func @transform_4(%arg0: i32) -> (i32, i32) {
    %c0_i32 = arith.constant 0 : i32
    %c0_i32_0 = arith.constant 0 : i32
    %c0_i32_1 = arith.constant 0 : i32
    return %c0_i32, %c0_i32_0 : i32, i32
  }
  func.func @transform_5(%arg0: i32) -> (i32, i32) {
    %c0_i32 = arith.constant 0 : i32
    %c0_i32_0 = arith.constant 0 : i32
    %c0_i32_1 = arith.constant 0 : i32
    return %c0_i32, %c0_i32_0 : i32, i32
  }
  func.func @transform_6(%arg0: i32) -> (i32, i32) {
    %c0_i32 = arith.constant 0 : i32
    %c0_i32_0 = arith.constant 0 : i32
    %c0_i32_1 = arith.constant 0 : i32
    return %c0_i32, %c0_i32_0 : i32, i32
  }
  func.func @transform_7(%arg0: i32) -> (i32, i32, i32) {
    %c0_i32 = arith.constant 0 : i32
    %c0_i32_0 = arith.constant 0 : i32
    %c0_i32_1 = arith.constant 0 : i32
    return %arg0, %c0_i32, %c0_i32_0 : i32, i32, i32
  }
}

</mosaic_0001>

<bundles_post_ra>
// kernel: tpu_custom_call.1
= control target key start
LH: loop header
LB: loop body
LE: loop exit
PB: predicated region body
PF: predicated region fallthrough
CT: control target
= control target key end

     0   :  { %12 = vsyncpa [#allocation5], 0  ;;  %s4822_s0 = inlined_call_operand.hbm [shape: bf16[2,8,2,8,8], index: 0, kind: input, shape index: {}]   ;;  %s4823_s1 = inlined_call_operand.vmem [shape: bf16[36,8], index: 1, kind: input, shape index: {}]   ;;  %s4824_s2 = inlined_call_operand.vmem [shape: f32[1,8], index: 2, kind: input, shape index: {}]   ;;  %s4825_s3 = inlined_call_operand.vmem [shape: bf16[72,8], index: 3, kind: input, shape index: {}]   ;;  %s4826_s4 = inlined_call_operand.vmem [shape: f32[1,8], index: 4, kind: input, shape index: {}]   ;;  %s4827_s5 = inlined_call_operand.vmem [shape: bf16[4,8], index: 5, kind: input, shape index: {}]   ;;  %s4828_s6 = inlined_call_operand.vmem [shape: f32[1,8], index: 6, kind: input, shape index: {}]   ;;  %s4829_s7 = inlined_call_operand.hbm [shape: bf16[2,8,64], index: 7, kind: output, shape index: {}]  }
   0x1   :  { %14 = vsyncpa [#allocation5 + $0x1], 0 }
   0x2   :  { %15 = vsyncpa [#allocation6], 0 }
   0x3   :  { %17 = vsyncpa [#allocation6 + $0x1], 0  ;;  %s3526_s24 = smov 0   ;;  %s3528_s25 = smov 0  }
   0x4   :  { %s3530_s26 = smov 0   ;;  %s3532_s27 = smov 0  }
   0x5 LB: > { %s3547_s28 = sadd.s32 4294967295, %s3467_s27   ;;  %s2923_s29 = sadd.s32 4294967294, %s3467_s27   ;;  %s3467_s27 = sphi %s3532_s27, %s4866_s27   ;;  %s3463_s26 = sphi %s3530_s26, %s4865_s26   ;;  %s3459_s25 = sphi %s3528_s25, %s4864_s25   ;;  %s3455_s24 = sphi %s3526_s24, %s4863_s24  }
   0x6   : > { %s3551_s30 = sadd.s32 1, %s3467_s27   ;;  %s30_s8 = sadd.s32 1, %s3463_s26 }
   0x7   : > { %s27_s9 = ssub.s32 %s3467_s27, %s3551_s30  ;;  %p37_p0 = scmp.ne.s32.totalorder %s3463_s26, %s3459_s25 }
   0x8   : > { %p28_p1 = scmp.eq.s32.totalorder %s27_s9, 0  ;;  %p38_p2 = scmp.eq.s32.totalorder %s3467_s27, 0 }
   0x9   : > { %p43_p3 = scmp.ne.s32.totalorder %s3459_s25, %s3455_s24  ;;  %p44_p4 = scmp.eq.s32.totalorder %s3547_s28, 0 }
   0xa   : > { %s3563_s10 = scalar_select %p28_p1, %s3463_s26, %s30_s8  }
   0xb   : > { %p3565_p5 = por %p38_p2, %p37_p0  ;;  %p3569_p6 = por %p44_p4, %p43_p3 }
   0xc   : > { %p193_p7 = scmp.eq.s32.totalorder %s3547_s28, 1  ;;  %p199_p8 = scmp.eq.s32.totalorder %s2923_s29, 1 }
   0xd   : > { %p3213_p10 = scmp.lt.s32.totalorder %s3467_s27, 2  ;;  %s237_s15 = sand.u32 1, %s3463_s26  }
   0xe   : > { %p3576_p11 = por %p193_p7, %p37_p0  ;;  %p3580_p12 = por %p199_p8, %p43_p3 }
   0xf   : > { %s3091_s16 = sshll.u32 %s3467_s27, 10  ;;  %s2926_s17 = sshll.u32 %s237_s15, 6 }
  0x10   : > { %s4833_s13 = scalar_select %p3576_p11, 1, 0 }
  0x11   : > { %s4834_s14 = scalar_select %p3580_p12, 1, 0 }
  0x12   : > { %s3589_s20 = scalar_lea.hbm %s4822_s0, %s3091_s16  ;;  %s241_s21 = scalar_lea.vmem [#allocation4], %s2926_s17 }
  0x13   : > { %s248_s22 = sshll.u32 %s241_s21, 4  ;;  %p3593_p13 = pnand %p3213_p10, %p3565_p5  ;;  %s3597_s22 = int_to_ptr.vmem [resolvable:$true] %s248_s22 }
  0x14   : > { %s3599_s29 = scalar_lea.sflag [#allocation5], %s237_s15  ;;  %s3371_s8 = scalar_lea.hbm %s3589_s20, 1024 }
  0x15   : > { %p3372_p0 = scmp.ne.s32.totalorder %s3589_s20, %s3371_s8  ;;  %p3373_p1 = pneg %p3593_p13 }
  0x16   : > { %s3376_s16 = scalar_lea.hbm %s4822_s0, 2048  ;;  %p3377_p4 = scmp.lt.u32.totalorder %s3589_s20, %s4822_s0 }
  0x17   : > { %p3374_p2 = pnand %p3373_p1, %p3372_p0  ;;  %p3378_p5 = scmp.lt.u32.totalorder %s3376_s16, %s3371_s8 }
  0x18   : > { %p3380_p8 = scmp.lt.u32.totalorder %s3371_s8, %s3589_s20 }
  0x19   : > { %p3375_p3 = pneg %p3374_p2  ;;  %p3379_p7 = por %p3378_p5, %p3377_p4 }
  0x1b   : > { %p3381_p10 = por %p3380_p8, %p3379_p7 }
  0x1d   : > { %p3382_p9 = pnand %p3381_p10, %p3375_p3 }
  0x1f   : > { %3385 = shalt.err (!%p3382_p9)
}
  0x20   : > { %s3386_s15 = scalar_lea.vmem %s3597_s22, 1024  ;;  %s3469_s19 = smov [#allocation4]  }
  0x21   : > { %p3387_p0 = scmp.ne.s32.totalorder %s3597_s22, %s3386_s15  ;;  %s3391_s21 = sshll.u32 %s3469_s19, 4  ;;  %s3392_s21 = int_to_ptr.vmem [resolvable:$false] %s3391_s21 }
  0x22   : > { %s3393_s9 = scalar_lea.vmem %s3392_s21, 2048  ;;  %p3394_p11 = scmp.lt.s32.totalorder %s3597_s22, %s3392_s21 }
  0x23   : > { %p3389_p2 = pnand %p3387_p0, %p3373_p1  ;;  %p3395_p4 = scmp.lt.s32.totalorder %s3393_s9, %s3386_s15 }
  0x25   : > { %p3390_p12 = pneg %p3389_p2  ;;  %p3396_p5 = por %p3395_p4, %p3394_p11 }
  0x27   : > { %p3397_p7 = pnand %p3396_p5, %p3390_p12 }
  0x29   : > { %3400 = shalt.err (!%p3397_p7)
}
  0x2a   : > { %s3470_s8 = smov 64   ;;  %s3471_s11 = smov 4  }
  0x2b   : > { %3208 = dma.hbm_to_vmem [thread:$0]  (!%p3593_p13), %s3589_s20, 1024, %s3597_s22, %s3599_s29, %s3470_s8, %s3470_s8, %s3471_s11  }
  0x2c   : > { %p2929_p9 = scmp.ge.s32.totalorder %s3467_s27, 1  ;;  %p256_p1 = scmp.lt.s32.totalorder %s3467_s27, 3 }
  0x2e   : > { %p257_p3 = pnand %p2929_p9, %p256_p1 }
  0x2f   : > { %s3630_s16 = sand.u32 (!%p257_p3), 1, %s3459_s25  }
  0x30   : > { %260 = sbr.rel (%p257_p3) target bundleno = 1244 (0x4dc), region = 48  ;;  %s2930_s17 = sshll.u32 (!%p257_p3), %s3630_s16, 6 }
  0x31   : > { %s263_s18 = scalar_lea.sflag (!%p257_p3), [#allocation5], %s3630_s16  ;;  %s3634_s15 = scalar_lea.vmem (!%p257_p3), [#allocation4], %s2930_s17 }
  0x37   : > { %3446 = dma.done.wait (%p3569_p6), %s263_s18, 1024  }
  0x38   : > { %3448 = vsyncadd (%p3569_p6), %s263_s18, 4294966272  ;;  %v2933_v0 = vld [vmem:[%s3634_s15 + $0xc] sm:$0xf]  ;;  %v2932_v1 = vld [vmem:[%s3634_s15 + $0x4] sm:$0xf]  ;;  %s3472_s12 = smov 8  }
  0x39   : > { %v2934_v2 = vld [vmem:[%s3634_s15 + $0x14] sm:$0xf]  ;;  %v703_v3 = vshrl.u32 %v2933_v0, 16  ;;  %v706_v4 = vshll.u32 %v2933_v0, 16  ;;  %v695_v5 = vshrl.u32 %v2932_v1, 16  ;;  %v698_v6 = vshll.u32 %v2932_v1, 16 }
  0x3a   : > { %v2935_v7 = vld [vmem:[%s3634_s15 + $0x1c] sm:$0xf]  ;;  %v711_v10 = vshrl.u32 %v2934_v2, 16  ;;  %v2936_v14 = vld [vmem:[%s3634_s15 + $0x24] sm:$0xf]  ;;  %v714_v19 = vshll.u32 %v2934_v2, 16 }
  0x3b   : > { %v705_v8 = vrot.slane %v703_v3, 7  ;;  %v697_v9 = vrot.slane %v695_v5, 7  ;;  %v719_v13 = vshrl.u32 %v2935_v7, 16  ;;  %v3646_v15 = vld [vmem:[%s3634_s15 + $0x2c] sm:$0xf]  ;;  %v722_v21 = vshll.u32 %v2935_v7, 16 }
  0x3c   : > { %v713_v18 = vrot.slane %v711_v10, 7  ;;  %v3651_v20 = vld [vmem:[%s3634_s15 + $0x34] sm:$0xf]  ;;  %v727_v23 = vshrl.u32 %v2936_v14, 16  ;;  %v3654_v24 = vld [vmem:[%s3634_s15 + $0x4] sm:$0xf] }
  0x3d   : > { %v708_v11 = vor.u32 %v706_v4, %v705_v8  ;;  %v700_v12 = vor.u32 %v698_v6, %v697_v9  ;;  %v709_v16 = vrot.slane %v705_v8, 4  ;;  %v701_v17 = vrot.slane %v697_v9, 4  ;;  %v3657_v25 = vld [vmem:[%s3634_s15 + $0xc] sm:$0xf]  ;;  %v3662_v28 = vld [vmem:[%s3634_s15 + $0x14] sm:$0xf] }
  0x3e   : > { %v721_v22 = vrot.slane %v719_v13, 7  ;;  %v735_v26 = vshrl.u32 %v3646_v15, 16  ;;  %v743_v27 = vshrl.u32 %v3651_v20, 16  ;;  %v3665_v29 = vld [vmem:[%s3634_s15 + $0x3c] sm:$0xf]  ;;  %v717_v30 = vrot.slane %v713_v18, 4 }
  0x3f   : > { %762 = vrot.lane.b32.xlu1 %v708_v11, %s3472_s12  ;;  %758 = vrot.lane.b32.xlu0 %v700_v12, %s3472_s12  ;;  %v716_v31 = vor.u32 %v714_v19, %v713_v18  ;;  %vm301_vm0 = vsmask.f32 256  ;;  %v730_v32 = vshll.u32 %v2936_v14, 16  ;;  %v867_v33 = vshrl.u32 %v3654_v24, 16  ;;  %v3672_v35 = vld [vmem:[%s3634_s15 + $0x1c] sm:$0xf] }
  0x40   : > { %v875_v34 = vshrl.u32 %v3657_v25, 16  ;;  %vm300_vm1 = vcmask 122880   ;;  %v729_v36 = vrot.slane %v727_v23, 7  ;;  %v738_v37 = vshll.u32 %v3646_v15, 16  ;;  %v3688_v48 = vld [vmem:[%s3634_s15 + $0x24] sm:$0xf] }
  0x41   : > { %v883_v38 = vshrl.u32 %v3662_v28, 16  ;;  %v751_v39 = vshrl.u32 %v3665_v29, 16  ;;  %v725_v40 = vrot.slane %v721_v22, 4  ;;  %v724_v41 = vor.u32 %v722_v21, %v721_v22  ;;  %v312_v51 = vld [vmem:[#allocation2 + $0x10] sm:$0x1]  ;;  %vm3705_vm5 = vmand %vm300_vm1, %vm301_vm0  ;;  %s3474_s20 = smov 116  }
  0x42   : > { %v3677_v42 = vrot.slane %v735_v26, 7  ;;  %v3679_v43 = vrot.slane %v743_v27, 7  ;;  %vm498_vm2 = vcmask 24576   ;;  %v746_v44 = vshll.u32 %v3651_v20, 16  ;;  %v405_v52 = vld [vmem:[%s3634_s15 + $0x8] sm:$0xf] }
  0x43   : > { %764 = vrot.lane.b32.xlu1 %v709_v16, %s3472_s12  ;;  %760 = vrot.lane.b32.xlu0 %v701_v17, %s3472_s12  ;;  %v870_v45 = vshll.u32 %v3654_v24, 16  ;;  %v878_v46 = vshll.u32 %v3657_v25, 16  ;;  %v891_v47 = vshrl.u32 %v3672_v35, 16  ;;  %v3690_v49 = vrot.slane %v867_v33, 7  ;;  %v3710_v62 = vld [vmem:[%s3634_s15 + $0x8] sm:$0xf]  ;;  %vm3756_vm8 = vmand %vm498_vm2, %vm301_vm0 }
  0x44   : > { %v3692_v50 = vrot.slane %v875_v34, 7  ;;  %vm372_vm3 = vsmask.f32 7938  ;;  %vm493_vm4 = vcmask 27648   ;;  %v733_v53 = vrot.slane %v729_v36, 4  ;;  %s3475_s22 = smov 124  }
  0x45   : > { %v732_v54 = vor.u32 %v730_v32, %v729_v36  ;;  %v3695_v55 = vrot.slane %v883_v38, 7  ;;  %v3697_v56 = vrot.slane %v751_v39, 7  ;;  %v741_v57 = vrot.slane %v3677_v42, 4  ;;  %v3718_v1 = vld [vmem:[%s3634_s15 + $0x2c] sm:$0xf]  ;;  %vm3776_vm9 = vmand %vm493_vm4, %vm372_vm3  ;;  %s3476_s23 = smov 12  }
  0x46   : > { %v749_v58 = vrot.slane %v3679_v43, 4  ;;  %v886_v59 = vshll.u32 %v3662_v28, 16  ;;  %v754_v60 = vshll.u32 %v3665_v29, 16  ;;  %v3714_v63 = vrot.slane %v891_v47, 7  ;;  %v309_v4 = vld [vmem:[#allocation2 + $0x8] sm:$0x1] }
  0x47   : > { %768 = vrot.lane.b32.xlu1 %v717_v30, %s3472_s12  ;;  %766 = vrot.lane.b32.xlu0 %v716_v31, %s3472_s12  ;;  %v899_v0 = vshrl.u32 %v3688_v48, 16  ;;  %v313_v2 = vsel %vm3705_vm5, 0, %v312_v51  ;;  %v421_v3 = vshrl.u32 %v405_v52, 16  ;;  %v873_v5 = vrot.slane %v3690_v49, 4  ;;  %v404_v9 = vld [vmem:[%s3634_s15] sm:$0xf] }
  0x48   : > { %v881_v6 = vrot.slane %v3692_v50, 4  ;;  %v894_v7 = vshll.u32 %v3672_v35, 16  ;;  %314 = vst [vmem:[#allocation2 + $0x10] sm:$0x1] %v313_v2  ;;  %v424_v8 = vshll.u32 %v405_v52, 16  ;;  %v889_v10 = vrot.slane %v3695_v55, 4 }
  0x49   : > { %v757_v11 = vrot.slane %v3697_v56, 4  ;;  %v902_v12 = vshll.u32 %v3688_v48, 16  ;;  %v3730_v13 = vld [vmem:[%s3634_s15 + $0x34] sm:$0xf]  ;;  %v562_v14 = vshrl.u32 %v3710_v62, 16  ;;  %v740_v16 = vor.u32 %v738_v37, %v3677_v42  ;;  %s3477_s29 = smov 16  }
  0x4a   : > { %v3734_v15 = vld [vmem:[%s3634_s15] sm:$0xf]  ;;  %v748_v17 = vor.u32 %v746_v44, %v3679_v43  ;;  %v423_v18 = vrot.slane %v421_v3, 7  ;;  %v310_v19 = vsel %vm3705_vm5, 0, %v309_v4  ;;  %v506_v20 = vld [vmem:[#allocation2 + $0x14] sm:$0x1] }
  0x4b   : > { %772 = vrot.lane.b32.xlu1 %v725_v40, %s3472_s12  ;;  %770 = vrot.lane.b32.xlu0 %v724_v41, %s3472_s12  ;;  %v406_v21 = vld [vmem:[%s3634_s15 + $0x10] sm:$0xf]  ;;  %v897_v22 = vrot.slane %v3714_v63, 4  ;;  %v3744_v23 = vrot.slane %v899_v0, 7  ;;  %311 = vst [vmem:[#allocation2 + $0x8] sm:$0x1] %v310_v19 }
  0x4c   : > { %v413_v26 = vshrl.u32 %v404_v9, 16  ;;  %v416_v27 = vshll.u32 %v404_v9, 16  ;;  %vm638_vm6 = vcmask 57376   ;;  %v315_v30 = vld [vmem:[#allocation2 + $0x18] sm:$0x1]  ;;  %v907_v31 = vshrl.u32 %v3718_v1, 16 }
  0x4d   : > { %v910_v32 = vshll.u32 %v3718_v1, 16  ;;  %v426_v33 = vor.u32 %v424_v8, %v423_v18  ;;  %v427_v34 = vrot.slane %v423_v18, 4  ;;  %v3749_v36 = vld [vmem:[%s3634_s15 + $0x10] sm:$0xf]  ;;  %vm633_vm7 = vcmask 60448   ;;  %vm3826_vm10 = vmand %vm638_vm6, %vm301_vm0  ;;  %s3478_s11 = smov 20  }
  0x4e   : > { %v3751_v37 = vrot.slane %v562_v14, 7  ;;  %v565_v38 = vshll.u32 %v3710_v62, 16  ;;  %v415_v39 = vrot.slane %v413_v26, 7  ;;  %v429_v41 = vshrl.u32 %v406_v21, 16  ;;  %v3761_v42 = vld [vmem:[%s3634_s15 + $0x18] sm:$0xf]  ;;  %vm3845_vm11 = vmand %vm633_vm7, %vm372_vm3 }
  0x4f   : > { %776 = vrot.lane.b32.xlu1 %v733_v53, %s3472_s12  ;;  %774 = vrot.lane.b32.xlu0 %v732_v54, %s3472_s12  ;;  %v915_v44 = vshrl.u32 %v3730_v13, 16  ;;  %v554_v47 = vshrl.u32 %v3734_v15, 16  ;;  %v507_v51 = vsel %vm3756_vm8, %v427_v34, %v506_v20  ;;  %v500_v52 = vld [vmem:[#allocation2 + $0xc] sm:$0x1]  ;;  %v316_v53 = vsel %vm3705_vm5, 0, %v315_v30  ;;  %s3482_s9 = smov 24  }
  0x50   : > { %v872_v54 = vor.u32 %v870_v45, %v3690_v49  ;;  %v503_v0 = vld [vmem:[#allocation2 + $0x10] sm:$0xf]  ;;  %v418_v2 = vor.u32 %v416_v27, %v415_v39  ;;  %508 = vst [vmem:[#allocation2 + $0x14] sm:$0x1] %v507_v51  ;;  %v419_v3 = vrot.slane %v415_v39, 4  ;;  %v432_v4 = vshll.u32 %v406_v21, 16 }
  0x51   : > { %317 = vst [vmem:[#allocation2 + $0x18] sm:$0x1] %v316_v53  ;;  %v504_v8 = vsel %vm3776_vm9, %v426_v33, %v503_v0  ;;  %v431_v24 = vrot.slane %v429_v41, 7  ;;  %v570_v45 = vshrl.u32 %v3749_v36, 16  ;;  %v437_v9 = vshrl.u32 %v3761_v42, 16  ;;  %s3483_s8 = smov 40  }
  0x52   : > { %v318_v14 = vld [vmem:[#allocation2 + $0x20] sm:$0x1]  ;;  %505 = vst [vmem:[#allocation2 + $0x10] sm:$0xf] %v504_v8  ;;  %v3789_v18 = vor.u32 %v565_v38, %v3751_v37  ;;  %v557_v19 = vshll.u32 %v3734_v15, 16  ;;  %v501_v20 = vsel %vm3756_vm8, %v419_v3, %v500_v52  ;;  %v556_v30 = vrot.slane %v554_v47, 7 }
  0x53   : > { %780 = vrot.lane.b32.xlu1 %v741_v57, %s3472_s12  ;;  %778 = vrot.lane.b32.xlu0 %v740_v16, %s3472_s12  ;;  %v3781_v57 = vld [vmem:[%s3634_s15 + $0x18] sm:$0xf]  ;;  %v918_v16 = vshll.u32 %v3730_v13, 16  ;;  %v512_v21 = vld [vmem:[#allocation2 + $0x1c] sm:$0x1]  ;;  %v568_v33 = vrot.slane %v3751_v37, 4  ;;  %v434_v38 = vor.u32 %v432_v4, %v431_v24 }
  0x54   : > { %v3795_v26 = vld [vmem:[%s3634_s15 + $0x20] sm:$0xf]  ;;  %v495_v27 = vld [vmem:[#allocation2 + $0x8] sm:$0xf]  ;;  %502 = vst [vmem:[#allocation2 + $0xc] sm:$0x1] %v501_v20 }
  0x55   : > { %v435_v34 = vrot.slane %v431_v24, 4  ;;  %v578_v39 = vshrl.u32 %v3781_v57, 16  ;;  %v496_v15 = vsel %vm3776_vm9, %v418_v2, %v495_v27  ;;  %v439_v41 = vrot.slane %v437_v9, 7  ;;  %v518_v51 = vld [vmem:[#allocation2 + $0x24] sm:$0x1]  ;;  %s3088_s19 = sshll.u32 %s3547_s28, 6 }
  0x56   : > { %v319_v37 = vsel %vm3705_vm5, 0, %v318_v14  ;;  %v3808_v47 = vld [vmem:[%s3634_s15 + $0x20] sm:$0xf]  ;;  %497 = vst [vmem:[#allocation2 + $0x8] sm:$0xf] %v496_v15  ;;  %v3812_v43 = vrot.slane %v570_v45, 7  ;;  %v880_v24 = vor.u32 %v878_v46, %v3692_v50  ;;  %v559_v45 = vor.u32 %v557_v19, %v556_v30  ;;  %s4778_s18 = scalar_lea.hbm %s4829_s7, %s3088_s19 }
  0x57   : > { %784 = vrot.lane.b32.xlu1 %v749_v58, %s3472_s12  ;;  %782 = vrot.lane.b32.xlu0 %v748_v17, %s3472_s12  ;;  %v513_v52 = vsel %vm3756_vm8, %v435_v34, %v512_v21  ;;  %v440_v58 = vshll.u32 %v3761_v42, 16  ;;  %320 = vst [vmem:[#allocation2 + $0x20] sm:$0x1] %v319_v37  ;;  %v445_v17 = vshrl.u32 %v3795_v26, 16  ;;  %v321_v53 = vld [vmem:[#allocation2 + $0x28] sm:$0x1] }
  0x58   : > { %v560_v0 = vrot.slane %v556_v30, 4  ;;  %514 = vst [vmem:[#allocation2 + $0x1c] sm:$0x1] %v513_v52  ;;  %v573_v2 = vshll.u32 %v3749_v36, 16  ;;  %v443_v3 = vrot.slane %v439_v41, 4  ;;  %v581_v4 = vshll.u32 %v3781_v57, 16 }
  0x59   : > { %v3819_v8 = vld [vmem:[%s3634_s15 + $0x28] sm:$0xf]  ;;  %v646_v9 = vld [vmem:[#allocation2 + $0x14] sm:$0x1]  ;;  %v576_v14 = vrot.slane %v3812_v43, 4  ;;  %v447_v20 = vrot.slane %v445_v17, 7 }
  0x5a   : > { %v509_v36 = vld [vmem:[#allocation2 + $0x18] sm:$0xf]  ;;  %v647_v25 = vsel %vm3826_vm10, %v568_v33, %v646_v9  ;;  %v519_v19 = vsel %vm3756_vm8, %v443_v3, %v518_v51  ;;  %v3841_v21 = vrot.slane %v578_v39, 7  ;;  %v524_v27 = vld [vmem:[#allocation2 + $0x2c] sm:$0x1]  ;;  %v586_v34 = vshrl.u32 %v3808_v47, 16 }
  0x5b   : > { %932 = vrot.lane.b32.xlu1 %v873_v5, %s3472_s12  ;;  %930 = vrot.lane.b32.xlu0 %v872_v54, %s3472_s12  ;;  %v510_v46 = vsel %vm3776_vm9, %v434_v38, %v509_v36  ;;  %v324_v30 = vld [vmem:[#allocation2 + $0x30] sm:$0x1]  ;;  %648 = vst [vmem:[#allocation2 + $0x14] sm:$0x1] %v647_v25  ;;  %v442_v54 = vor.u32 %v440_v58, %v439_v41  ;;  %520 = vst [vmem:[#allocation2 + $0x24] sm:$0x1] %v519_v19 }
  0x5c   : > { %v643_v5 = vld [vmem:[#allocation2 + $0x10] sm:$0xf]  ;;  %511 = vst [vmem:[#allocation2 + $0x18] sm:$0xf] %v510_v46  ;;  %v451_v33 = vrot.slane %v447_v20, 4  ;;  %v322_v39 = vsel %vm3705_vm5, 0, %v321_v53  ;;  %v575_v36 = vor.u32 %v573_v2, %v3812_v43 }
  0x5d   : > { %v3853_v15 = vld [vmem:[%s3634_s15 + $0x3c] sm:$0xf]  ;;  %v644_v38 = vsel %vm3845_vm11, %v3789_v18, %v643_v5  ;;  %v640_v51 = vld [vmem:[#allocation2 + $0xc] sm:$0x1]  ;;  %v448_v37 = vshll.u32 %v3795_v26, 16  ;;  %v453_v41 = vshrl.u32 %v3819_v8, 16  ;;  %v888_v26 = vor.u32 %v886_v59, %v3695_v55 }
  0x5e   : > { %323 = vst [vmem:[#allocation2 + $0x28] sm:$0x1] %v322_v39  ;;  %v3861_v52 = vld [vmem:[%s3634_s15 + $0x30] sm:$0xf]  ;;  %645 = vst [vmem:[#allocation2 + $0x10] sm:$0xf] %v644_v38  ;;  %v641_v58 = vsel %vm3826_vm10, %v560_v0, %v640_v51  ;;  %v525_v53 = vsel %vm3756_vm8, %v451_v33, %v524_v27 }
  0x5f   : > { %v584_v17 = vrot.slane %v3841_v21, 4  ;;  %v456_v18 = vshll.u32 %v3819_v8, 16  ;;  %v530_v3 = vld [vmem:[#allocation2 + $0x34] sm:$0x1]  ;;  %v3870_v9 = vld [vmem:[%s3634_s15 + $0x28] sm:$0xf]  ;;  %936 = vrot.lane.b32.xlu1 %v881_v6, %s3472_s12  ;;  %934 = vrot.lane.b32.xlu0 %v880_v24, %s3472_s12  ;;  %v450_v24 = vor.u32 %v448_v37, %v447_v20 }
  0x60   : > { %v635_v0 = vld [vmem:[#allocation2 + $0x8] sm:$0xf]  ;;  %642 = vst [vmem:[#allocation2 + $0xc] sm:$0x1] %v641_v58  ;;  %v515_v25 = vld [vmem:[#allocation2 + $0x20] sm:$0xf] }
  0x61   : > { %526 = vst [vmem:[#allocation2 + $0x2c] sm:$0x1] %v525_v53  ;;  %v455_v8 = vrot.slane %v453_v41, 7  ;;  %v325_v46 = vsel %vm3705_vm5, 0, %v324_v30  ;;  %v3883_v19 = vld [vmem:[%s3634_s15 + $0x30] sm:$0xf]  ;;  %v636_v50 = vsel %vm3845_vm11, %v559_v45, %v635_v0  ;;  %v516_v28 = vsel %vm3776_vm9, %v442_v54, %v515_v25 }
  0x62   : > { %v652_v6 = vld [vmem:[#allocation2 + $0x1c] sm:$0x1]  ;;  %v3889_v59 = vrot.slane %v586_v34, 7  ;;  %326 = vst [vmem:[#allocation2 + $0x30] sm:$0x1] %v325_v46  ;;  %v461_v43 = vshrl.u32 %v3861_v52, 16  ;;  %v756_v45 = vor.u32 %v754_v60, %v3697_v56  ;;  %v583_v41 = vor.u32 %v581_v4, %v3841_v21 }
  0x63   : > { %637 = vst [vmem:[#allocation2 + $0x8] sm:$0xf] %v636_v50  ;;  %v653_v2 = vsel %vm3826_vm10, %v576_v14, %v652_v6  ;;  %517 = vst [vmem:[#allocation2 + $0x20] sm:$0xf] %v516_v28  ;;  %v459_v27 = vrot.slane %v455_v8, 4  ;;  %v594_v30 = vshrl.u32 %v3870_v9, 16  ;;  %940 = vrot.lane.b32.xlu1 %v889_v10, %s3472_s12  ;;  %938 = vrot.lane.b32.xlu0 %v888_v26, %s3472_s12 }
  0x64   : > { %v536_v5 = vld [vmem:[#allocation2 + $0x3c] sm:$0x1]  ;;  %v923_v54 = vshrl.u32 %v3853_v15, 16  ;;  %654 = vst [vmem:[#allocation2 + $0x1c] sm:$0x1] %v653_v2  ;;  %v463_v33 = vrot.slane %v461_v43, 7  ;;  %v458_v60 = vor.u32 %v456_v18, %v455_v8  ;;  %v896_v21 = vor.u32 %v894_v7, %v3714_v63 }
  0x65   : > { %v327_v34 = vld [vmem:[#allocation2 + $0x38] sm:$0x1]  ;;  %v3905_v14 = vrot.slane %v907_v31, 7  ;;  %v658_v39 = vld [vmem:[#allocation2 + $0x24] sm:$0x1]  ;;  %v592_v29 = vrot.slane %v3889_v59, 4  ;;  %v531_v38 = vsel %vm3756_vm8, %v459_v27, %v530_v3 }
  0x66   : > { %v649_v20 = vld [vmem:[#allocation2 + $0x18] sm:$0xf]  ;;  %v659_v55 = vsel %vm3826_vm10, %v584_v17, %v658_v39  ;;  %v521_v10 = vld [vmem:[#allocation2 + $0x28] sm:$0xf]  ;;  %532 = vst [vmem:[#allocation2 + $0x34] sm:$0x1] %v531_v38 }
  0x67   : > { %v650_v51 = vsel %vm3845_vm11, %v575_v36, %v649_v20  ;;  %v467_v37 = vrot.slane %v463_v33, 4  ;;  %v602_v31 = vshrl.u32 %v3883_v19, 16  ;;  %660 = vst [vmem:[#allocation2 + $0x24] sm:$0x1] %v659_v55  ;;  %v522_v58 = vsel %vm3776_vm9, %v450_v24, %v521_v10  ;;  %v303_v3 = vld [vmem:[#allocation2 + $0x4] sm:$0x1]  ;;  %788 = vrot.lane.b32.xlu1 %v757_v11, %s3472_s12  ;;  %786 = vrot.lane.b32.xlu0 %v756_v45, %s3472_s12 }
  0x68   : > { %651 = vst [vmem:[#allocation2 + $0x18] sm:$0xf] %v650_v51  ;;  %v596_v53 = vrot.slane %v594_v30, 7  ;;  %v328_v18 = vsel %vm3705_vm5, 0, %v327_v34  ;;  %v3923_v17 = vld [vmem:[%s3634_s15 + $0x38] sm:$0xf] }
  0x69   : > { %v589_v26 = vshll.u32 %v3808_v47, 16  ;;  %v664_v0 = vld [vmem:[#allocation2 + $0x2c] sm:$0x1]  ;;  %523 = vst [vmem:[#allocation2 + $0x28] sm:$0xf] %v522_v58  ;;  %v464_v36 = vshll.u32 %v3861_v52, 16  ;;  %v537_v57 = vsel %vm3756_vm8, %v467_v37, %v536_v5 }
  0x6a   : > { %329 = vst [vmem:[#allocation2 + $0x38] sm:$0x1] %v328_v18  ;;  %v330_v4 = vld [vmem:[#allocation2 + $0x40] sm:$0x1]  ;;  %v665_v47 = vsel %vm3826_vm10, %v592_v29, %v664_v0  ;;  %v600_v25 = vrot.slane %v596_v53, 4  ;;  %vm298_vm12 = vcmask 125952  }
  0x6b   : > { %v527_v52 = vld [vmem:[#allocation2 + $0x30] sm:$0xf]  ;;  %538 = vst [vmem:[#allocation2 + $0x3c] sm:$0x1] %v537_v57  ;;  %v655_v8 = vld [vmem:[#allocation2 + $0x20] sm:$0xf]  ;;  %v591_v2 = vor.u32 %v589_v26, %v3889_v59  ;;  %v466_v24 = vor.u32 %v464_v36, %v463_v33  ;;  %944 = vrot.lane.b32.xlu1 %v897_v22, %s3472_s12  ;;  %942 = vrot.lane.b32.xlu0 %v896_v21, %s3472_s12 }
  0x6c   : > { %666 = vst [vmem:[#allocation2 + $0x2c] sm:$0x1] %v665_v47  ;;  %v528_v56 = vsel %vm3776_vm9, %v458_v60, %v527_v52  ;;  %v604_v11 = vrot.slane %v602_v31, 7  ;;  %v304_v46 = vsel %vm3705_vm5, 0, %v303_v3  ;;  %v905_v35 = vrot.slane %v3744_v23, 4  ;;  %p4860_p11 = scmp.ne.s32.totalorder %s4833_s13, 0 }
  0x6d   : > { %v656_v7 = vsel %vm3845_vm11, %v583_v41, %v655_v8  ;;  %v597_v50 = vshll.u32 %v3870_v9, 16  ;;  %529 = vst [vmem:[#allocation2 + $0x30] sm:$0xf] %v528_v56  ;;  %v3473_v6 = vmov 0   ;;  %305 = vst [vmem:[#allocation2 + $0x4] sm:$0x1] %v304_v46  ;;  %v904_v9 = vor.u32 %v902_v12, %v3744_v23 }
  0x6e   : > { %299 = vst.msk [vmem:[#allocation2] sm:$0xf] %vm298_vm12, %v3473_v6  ;;  %v469_v28 = vshrl.u32 %v3923_v17, 16  ;;  %v3949_v43 = vld [vmem:[%s3634_s15 + $0x38] sm:$0xf]  ;;  %v608_v27 = vrot.slane %v604_v11, 4  ;;  %v912_v23 = vor.u32 %v910_v32, %v3905_v14 }
  0x6f   : > { %657 = vst [vmem:[#allocation2 + $0x20] sm:$0xf] %v656_v7  ;;  %v331_v30 = vsel %vm3705_vm5, 0, %v330_v4  ;;  %v670_v5 = vld [vmem:[#allocation2 + $0x34] sm:$0x1]  ;;  %v472_v34 = vshll.u32 %v3923_v17, 16  ;;  %v599_v39 = vor.u32 %v597_v50, %v596_v53  ;;  %948 = vrot.lane.b32.xlu1 %v905_v35, %s3472_s12  ;;  %946 = vrot.lane.b32.xlu0 %v904_v9, %s3472_s12 }
  0x70   : > { %v471_v45 = vrot.slane %v469_v28, 7  ;;  %332 = vst [vmem:[#allocation2 + $0x40] sm:$0x1] %v331_v30  ;;  %v913_v59 = vrot.slane %v3905_v14, 4  ;;  %v917_v33 = vrot.slane %v915_v44, 7  ;;  %v671_v63 = vsel %vm3826_vm10, %v600_v25, %v670_v5  ;;  %s3485_s28 = smov [#allocation7]  }
  0x71   : > { %v542_v22 = vld [vmem:[#allocation2 + $0x44] sm:$0x1]  ;;  %v661_v20 = vld [vmem:[#allocation2 + $0x28] sm:$0xf]  ;;  %672 = vst [vmem:[#allocation2 + $0x34] sm:$0x1] %v671_v63 }
  0x72   : > { %v533_v29 = vld [vmem:[#allocation2 + $0x38] sm:$0xf]  ;;  %v475_v48 = vrot.slane %v471_v45, 4  ;;  %v610_v12 = vshrl.u32 %v3949_v43, 16  ;;  %v662_v60 = vsel %vm3845_vm11, %v591_v2, %v661_v20  ;;  %v676_v38 = vld [vmem:[#allocation2 + $0x3c] sm:$0x1]  ;;  %v474_v1 = vor.u32 %v472_v34, %v471_v45 }
  0x73   : > { %v534_v44 = vsel %vm3776_vm9, %v466_v24, %v533_v29  ;;  %663 = vst [vmem:[#allocation2 + $0x28] sm:$0xf] %v662_v60  ;;  %v605_v51 = vshll.u32 %v3883_v19, 16  ;;  %v677_v55 = vsel %vm3826_vm10, %v608_v27, %v676_v38  ;;  %v926_v14 = vshll.u32 %v3853_v15, 16  ;;  %952 = vrot.lane.b32.xlu1 %v913_v59, %s3472_s12  ;;  %950 = vrot.lane.b32.xlu0 %v912_v23, %s3472_s12  ;;  %v816_v35 = vld [vmem:[#allocation2 + $0x10] sm:$0xf] }
  0x74   : > { %535 = vst [vmem:[#allocation2 + $0x38] sm:$0xf] %v534_v44  ;;  %v543_v32 = vsel %vm3756_vm8, %v475_v48, %v542_v22  ;;  %v667_v10 = vld [vmem:[#allocation2 + $0x30] sm:$0xf]  ;;  %678 = vst [vmem:[#allocation2 + $0x3c] sm:$0x1] %v677_v55  ;;  %v920_v18 = vor.u32 %v918_v16, %v917_v33 }
  0x75   : > { %v306_v37 = vld [vmem:[#allocation2] sm:$0x1]  ;;  %544 = vst [vmem:[#allocation2 + $0x44] sm:$0x1] %v543_v32  ;;  %v925_v31 = vrot.slane %v923_v54, 7  ;;  %v668_v19 = vsel %vm3845_vm11, %v599_v39, %v667_v10  ;;  %v612_v58 = vrot.slane %v610_v12, 7  ;;  %v607_v15 = vor.u32 %v605_v51, %v604_v11 }
  0x76   : > { %v307_v41 = vsel %vm3705_vm5, 0, %v306_v37  ;;  %669 = vst [vmem:[#allocation2 + $0x30] sm:$0xf] %v668_v19  ;;  %v921_v53 = vrot.slane %v917_v33, 4  ;;  %v613_v3 = vshll.u32 %v3949_v43, 16  ;;  %vm806_vm13 = vcmask 93248  }
  0x77   : > { %308 = vst [vmem:[#allocation2] sm:$0x1] %v307_v41  ;;  %v539_v40 = vld [vmem:[#allocation2 + $0x40] sm:$0xf]  ;;  %v616_v61 = vrot.slane %v612_v58, 4  ;;  %954 = vrot.lane.b32.xlu0 %v920_v18, %s3472_s12  ;;  %v929_v26 = vrot.slane %v925_v31, 4  ;;  %v928_v0 = vor.u32 %v926_v14, %v925_v31  ;;  %vm4009_vm14 = vmand %vm806_vm13, %vm372_vm3 }
  0x78   : > { %v540_v54 = vsel %vm3776_vm9, %v474_v1, %v539_v40  ;;  %956 = vrot.lane.b32.xlu1 %v921_v53, %s3472_s12  ;;  %v1038_v13 = vld [vmem:[#allocation2 + $0x4] sm:$0x1]  ;;  %v615_v57 = vor.u32 %v613_v3, %v612_v58  ;;  %v808_v49 = vld [vmem:[#allocation2 + $0x8] sm:$0xf]  ;;  %vm811_vm15 = vcmask 90176   ;;  %vm983_vm2 = vcmask 122976  }
  0x79   : > { %541 = vst [vmem:[#allocation2 + $0x40] sm:$0xf] %v540_v54  ;;  %vm4018_vm1 = vmand %vm811_vm15, %vm301_vm0  ;;  %v819_v24 = vld [vmem:[#allocation2 + $0x14] sm:$0x1]  ;;  %v813_v27 = vld [vmem:[#allocation2 + $0xc] sm:$0x1] }
  0x7a   : > { %v825_v34 = vld [vmem:[#allocation2 + $0x1c] sm:$0x1]  ;;  %v822_v59 = vld [vmem:[#allocation2 + $0x18] sm:$0xf]  ;;  %v831_v39 = vld [vmem:[#allocation2 + $0x24] sm:$0x1] }
  0x7b   : > { %v673_v17 = vld [vmem:[#allocation2 + $0x38] sm:$0xf]  ;;  %958 = vrot.lane.b32.xlu0 %v928_v0, %s3472_s12  ;;  %v828_v29 = vld [vmem:[#allocation2 + $0x20] sm:$0xf]  ;;  %v837_v38 = vld [vmem:[#allocation2 + $0x2c] sm:$0x1] }
  0x7c   : > { %v674_v36 = vsel %vm3845_vm11, %v607_v15, %v673_v17  ;;  %v682_v16 = vld [vmem:[#allocation2 + $0x44] sm:$0x1]  ;;  %960 = vrot.lane.b32.xlu1 %v929_v26, %s3472_s12  ;;  %v834_v44 = vld [vmem:[#allocation2 + $0x28] sm:$0xf]  ;;  %v843_v14 = vld [vmem:[#allocation2 + $0x34] sm:$0x1] }
  0x7d   : > { %675 = vst [vmem:[#allocation2 + $0x38] sm:$0xf] %v674_v36  ;;  %v683_v62 = vsel %vm3826_vm10, %v616_v61, %v682_v16  ;;  %v840_v10 = vld [vmem:[#allocation2 + $0x30] sm:$0xf]  ;;  %v849_v58 = vld [vmem:[#allocation2 + $0x3c] sm:$0x1]  ;;  %vm4047_vm5 = vmand %vm983_vm2, %vm301_vm0 }
  0x7e   : > { %v1030_v4 = vld [vmem:[#allocation2] sm:$0xf]  ;;  %684 = vst [vmem:[#allocation2 + $0x44] sm:$0x1] %v683_v62  ;;  %vm978_vm4 = vcmask 126048   ;;  %vm1554_vm7 = vcmask 1041408  }
  0x7f   : > { %v2956_v21 = vcombine.low %v1030_v4, %v1038_v13  ;;  %v2948_v47 = vcombine.low %v1030_v4, %v1030_v4  ;;  %vm4052_vm6 = vmand %vm978_vm4, %vm372_vm3  ;;  %vm333_vm8 = vcmask 60416   ;;  %vm335_vm9 = vcmask 57344  }
  0x80   : > { %v679_v25 = vld [vmem:[#allocation2 + $0x40] sm:$0xf]  ;;  %334 = vst.msk [vmem:[#allocation3] sm:$0xf] %vm333_vm8, %v3473_v6  ;;  %338 = vst.msk [vmem:[#allocation3 + $0x48] sm:$0xf] %vm333_vm8, %v3473_v6 }
  0x81   : > { %v680_v52 = vsel %vm3845_vm11, %v615_v57, %v679_v25  ;;  %v1135_v8 = vshrl.u32 %v2956_v21, 16  ;;  %v1137_v56 = vshll.u32 %v2956_v21, 16  ;;  %1094 = vrot.lane.b32.xlu0 %v2948_v47, %s3474_s20  ;;  %vm4227_vm10 = vmand %vm335_vm9, %vm301_vm0  ;;  %336 = vst.msk [vmem:[#allocation3 + $0x4] sm:$0x1] %vm335_vm9, %v3473_v6  ;;  %vm1374_vm0 = vcmask 31744  }
  0x82   : > { %681 = vst [vmem:[#allocation2 + $0x40] sm:$0xf] %v680_v52  ;;  %339 = vst.msk [vmem:[#allocation3 + $0x4c] sm:$0x1] %vm335_vm9, %v3473_v6  ;;  %vm1399_vm12 = vcmask 64512   ;;  %vm1408_vm13 = vcmask 97280  }
  0x83   : > { %v1139_v11 = vrot.slane %v1137_v56, 1  ;;  %vm4236_vm11 = vmand %vm335_vm9, %vm372_vm3  ;;  %vm1442_vm15 = vcmask 162816   ;;  %vm1468_vm2 = vcmask 228352   ;;  %vm1485_vm4 = vcmask 261120  }
  0x84   : > { %v846_v40 = vld [vmem:[#allocation2 + $0x38] sm:$0xf]  ;;  %vm2484_vm9 = vcmask 392192  }
  0x85   : > { %v1140_v42 = vor.u32 %v1139_v11, %v1135_v8 }
  0x87   : > { %1190 = vrot.lane.b32.xlu0 %v1140_v42, %s3475_s22 }
  0xb1   : > { %v763_v7 = vpop.permute.xlu1 %762  ;;  %v759_v50 = vpop.permute.xlu0 %758 }
  0xb2   : > { %v817_v28 = vsel %vm4009_vm14, %v763_v7, %v816_v35  ;;  %v809_v43 = vsel %vm4009_vm14, %v759_v50, %v808_v49  ;;  %v855_v7 = vld [vmem:[#allocation2 + $0x44] sm:$0x1]  ;;  %v852_v50 = vld [vmem:[#allocation2 + $0x40] sm:$0xf] }
  0xb3   : > { %818 = vst [vmem:[#allocation2 + $0x10] sm:$0xf] %v817_v28  ;;  %810 = vst [vmem:[#allocation2 + $0x8] sm:$0xf] %v809_v43 }
  0xb5   : > { %v765_v30 = vpop.permute.xlu1 %764  ;;  %v761_v9 = vpop.permute.xlu0 %760 }
  0xb6   : > { %v820_v5 = vsel %vm4018_vm1, %v765_v30, %v819_v24  ;;  %v814_v45 = vsel %vm4018_vm1, %v761_v9, %v813_v27 }
  0xb7   : > { %821 = vst [vmem:[#allocation2 + $0x14] sm:$0x1] %v820_v5  ;;  %815 = vst [vmem:[#allocation2 + $0xc] sm:$0x1] %v814_v45 }
  0xb9   : > { %v769_v33 = vpop.permute.xlu1 %768  ;;  %v767_v63 = vpop.permute.xlu0 %766 }
  0xba   : > { %v826_v22 = vsel %vm4018_vm1, %v769_v33, %v825_v34  ;;  %v823_v20 = vsel %vm4009_vm14, %v767_v63, %v822_v59  ;;  %v980_v36 = vld [vmem:[#allocation2 + $0x8] sm:$0xf]  ;;  %v988_v62 = vld [vmem:[#allocation2 + $0x10] sm:$0xf] }
  0xbb   : > { %827 = vst [vmem:[#allocation2 + $0x1c] sm:$0x1] %v826_v22  ;;  %824 = vst [vmem:[#allocation2 + $0x18] sm:$0xf] %v823_v20 }
  0xbd   : > { %v773_v48 = vpop.permute.xlu1 %772  ;;  %v771_v12 = vpop.permute.xlu0 %770 }
  0xbe   : > { %v832_v23 = vsel %vm4018_vm1, %v773_v48, %v831_v39  ;;  %v829_v60 = vsel %vm4009_vm14, %v771_v12, %v828_v29  ;;  %v985_v26 = vld [vmem:[#allocation2 + $0xc] sm:$0x1]  ;;  %v991_v57 = vld [vmem:[#allocation2 + $0x14] sm:$0x1] }
  0xbf   : > { %833 = vst [vmem:[#allocation2 + $0x24] sm:$0x1] %v832_v23  ;;  %830 = vst [vmem:[#allocation2 + $0x20] sm:$0xf] %v829_v60 }
  0xc1   : > { %v777_v51 = vpop.permute.xlu1 %776  ;;  %v775_v55 = vpop.permute.xlu0 %774 }
  0xc2   : > { %v838_v1 = vsel %vm4018_vm1, %v777_v51, %v837_v38  ;;  %v835_v32 = vsel %vm4009_vm14, %v775_v55, %v834_v44  ;;  %v997_v52 = vld [vmem:[#allocation2 + $0x1c] sm:$0x1]  ;;  %v994_v11 = vld [vmem:[#allocation2 + $0x18] sm:$0xf] }
  0xc3   : > { %839 = vst [vmem:[#allocation2 + $0x2c] sm:$0x1] %v838_v1  ;;  %836 = vst [vmem:[#allocation2 + $0x28] sm:$0xf] %v835_v32 }
  0xc5   : > { %v781_v37 = vpop.permute.xlu1 %780  ;;  %v779_v31 = vpop.permute.xlu0 %778 }
  0xc6   : > { %v844_v19 = vsel %vm4018_vm1, %v781_v37, %v843_v14  ;;  %v841_v41 = vsel %vm4009_vm14, %v779_v31, %v840_v10  ;;  %v1003_v5 = vld [vmem:[#allocation2 + $0x24] sm:$0x1]  ;;  %v1000_v63 = vld [vmem:[#allocation2 + $0x20] sm:$0xf] }
  0xc7   : > { %845 = vst [vmem:[#allocation2 + $0x34] sm:$0x1] %v844_v19  ;;  %842 = vst [vmem:[#allocation2 + $0x30] sm:$0xf] %v841_v41 }
  0xc9   : > { %v785_v53 = vpop.permute.xlu1 %784  ;;  %v783_v18 = vpop.permute.xlu0 %782 }
  0xca   : > { %v850_v15 = vsel %vm4018_vm1, %v785_v53, %v849_v58  ;;  %v847_v54 = vsel %vm4009_vm14, %v783_v18, %v846_v40  ;;  %v1009_v20 = vld [vmem:[#allocation2 + $0x2c] sm:$0x1]  ;;  %v1006_v38 = vld [vmem:[#allocation2 + $0x28] sm:$0xf] }
  0xcb   : > { %851 = vst [vmem:[#allocation2 + $0x3c] sm:$0x1] %v850_v15  ;;  %848 = vst [vmem:[#allocation2 + $0x38] sm:$0xf] %v847_v54 }
  0xcd   : > { %v933_v17 = vpop.permute.xlu1 %932  ;;  %v931_v0 = vpop.permute.xlu0 %930 }
  0xce   : > { %v986_v13 = vsel %vm4047_vm5, %v933_v17, %v985_v26  ;;  %v981_v16 = vsel %vm4052_vm6, %v931_v0, %v980_v36  ;;  %v1015_v55 = vld [vmem:[#allocation2 + $0x34] sm:$0x1]  ;;  %v1012_v37 = vld [vmem:[#allocation2 + $0x30] sm:$0xf] }
  0xcf   : > { %987 = vst [vmem:[#allocation2 + $0xc] sm:$0x1] %v986_v13  ;;  %982 = vst [vmem:[#allocation2 + $0x8] sm:$0xf] %v981_v16 }
  0xd1   : > { %v937_v4 = vpop.permute.xlu1 %936  ;;  %v935_v21 = vpop.permute.xlu0 %934 }
  0xd2   : > { %v992_v47 = vsel %vm4047_vm5, %v937_v4, %v991_v57  ;;  %v989_v25 = vsel %vm4052_vm6, %v935_v21, %v988_v62  ;;  %v1021_v58 = vld [vmem:[#allocation2 + $0x3c] sm:$0x1]  ;;  %v1018_v15 = vld [vmem:[#allocation2 + $0x38] sm:$0xf] }
  0xd3   : > { %993 = vst [vmem:[#allocation2 + $0x14] sm:$0x1] %v992_v47  ;;  %990 = vst [vmem:[#allocation2 + $0x10] sm:$0xf] %v989_v25 }
  0xd5   : > { %v941_v8 = vpop.permute.xlu1 %940  ;;  %v939_v56 = vpop.permute.xlu0 %938 }
  0xd6   : > { %v998_v42 = vsel %vm4047_vm5, %v941_v8, %v997_v52  ;;  %v995_v35 = vsel %vm4052_vm6, %v939_v56, %v994_v11  ;;  %v4068_v49 = vld [vmem:[#allocation2 + $0x8] sm:$0xf] }
  0xd7   : > { %999 = vst [vmem:[#allocation2 + $0x1c] sm:$0x1] %v998_v42  ;;  %996 = vst [vmem:[#allocation2 + $0x18] sm:$0xf] %v995_v35  ;;  %v2949_v28 = vcombine.low %v4068_v49, %v4068_v49  ;;  %v4081_v34 = vld [vmem:[#allocation2 + $0x8] sm:$0xf] }
  0xd8   : > { %v2964_v29 = vcombine.low %v4081_v34, %v4081_v34 }
  0xd9   : > { %v789_v43 = vpop.permute.xlu1 %788  ;;  %v787_v24 = vpop.permute.xlu0 %786  ;;  %1096 = vrot.lane.b32.xlu1 %v2949_v28, %s3474_s20 }
  0xda   : > { %v856_v27 = vsel %vm4018_vm1, %v789_v43, %v855_v7  ;;  %v853_v30 = vsel %vm4009_vm14, %v787_v24, %v852_v50  ;;  %v4077_v9 = vld [vmem:[#allocation2 + $0x10] sm:$0xf]  ;;  %v1040_v11 = vld [vmem:[#allocation2 + $0x14] sm:$0x1]  ;;  %v1039_v7 = vld [vmem:[#allocation2 + $0xc] sm:$0x1] }
  0xdb   : > { %857 = vst [vmem:[#allocation2 + $0x44] sm:$0x1] %v856_v27  ;;  %854 = vst [vmem:[#allocation2 + $0x40] sm:$0xf] %v853_v30  ;;  %v2950_v45 = vcombine.low %v4077_v9, %v4077_v9  ;;  %v4094_v48 = vld [vmem:[#allocation2 + $0x10] sm:$0xf]  ;;  %v2958_v50 = vcombine.low %v4077_v9, %v1040_v11  ;;  %v2957_v30 = vcombine.low %v4068_v49, %v1039_v7 }
  0xdc   : > { %v2965_v1 = vcombine.low %v4094_v48, %v4094_v48  ;;  %v1054_v24 = vld [vmem:[#allocation2 + $0xc] sm:$0x1]  ;;  %vm1425_vm14 = vcmask 130048   ;;  %vm1451_vm1 = vcmask 195584  }
  0xdd   : > { %v945_v59 = vpop.permute.xlu1 %944  ;;  %v943_v33 = vpop.permute.xlu0 %942  ;;  %1098 = vrot.lane.b32.xlu0 %v2950_v45, %s3474_s20  ;;  %v1151_v45 = vshll.u32 %v2958_v50, 16 }
  0xde   : > { %v1004_v2 = vsel %vm4047_vm5, %v945_v59, %v1003_v5  ;;  %v1001_v46 = vsel %vm4052_vm6, %v943_v33, %v1000_v63  ;;  %v4088_v22 = vld [vmem:[#allocation2 + $0x18] sm:$0xf]  ;;  %v2972_v5 = vcombine.low %v4081_v34, %v1054_v24  ;;  %v1041_v59 = vld [vmem:[#allocation2 + $0x1c] sm:$0x1]  ;;  %v1144_v63 = vshll.u32 %v2957_v30, 16 }
  0xdf   : > { %1005 = vst [vmem:[#allocation2 + $0x24] sm:$0x1] %v1004_v2  ;;  %1002 = vst [vmem:[#allocation2 + $0x20] sm:$0xf] %v1001_v46  ;;  %v2951_v39 = vcombine.low %v4088_v22, %v4088_v22  ;;  %v4096_v12 = vld [vmem:[#allocation2 + $0x18] sm:$0xf]  ;;  %v2959_v2 = vcombine.low %v4088_v22, %v1041_v59 }
  0xe0   : > { %v2966_v32 = vcombine.low %v4096_v12, %v4096_v12  ;;  %v1056_v33 = vld [vmem:[#allocation2 + $0x1c] sm:$0x1]  ;;  %v1055_v46 = vld [vmem:[#allocation2 + $0x14] sm:$0x1]  ;;  %v1273_v49 = vshll.u32 %v2972_v5, 16  ;;  %v1149_v34 = vshrl.u32 %v2958_v50, 16 }
  0xe1   : > { %v949_v23 = vpop.permute.xlu1 %948  ;;  %v947_v60 = vpop.permute.xlu0 %946  ;;  %1100 = vrot.lane.b32.xlu1 %v2951_v39, %s3474_s20  ;;  %1230 = vrot.lane.b32.xlu0 %v2964_v29, %s3472_s12  ;;  %v1153_v39 = vrot.slane %v1151_v45, 1  ;;  %v1271_v22 = vshrl.u32 %v2972_v5, 16 }
  0xe2   : > { %v1010_v44 = vsel %vm4047_vm5, %v949_v23, %v1009_v20  ;;  %v1007_v51 = vsel %vm4052_vm6, %v947_v60, %v1006_v38  ;;  %v1027_v26 = vld [vmem:[#allocation2 + $0x44] sm:$0x1]  ;;  %v1024_v16 = vld [vmem:[#allocation2 + $0x40] sm:$0xf]  ;;  %v2974_v20 = vcombine.low %v4096_v12, %v1056_v33  ;;  %v1146_v23 = vrot.slane %v1144_v63, 1 }
  0xe3   : > { %1011 = vst [vmem:[#allocation2 + $0x2c] sm:$0x1] %v1010_v44  ;;  %1008 = vst [vmem:[#allocation2 + $0x28] sm:$0xf] %v1007_v51  ;;  %v1154_v60 = vor.u32 %v1153_v39, %v1149_v34  ;;  %v1275_v38 = vrot.slane %v1273_v49, 1  ;;  %v1158_v44 = vshll.u32 %v2959_v2, 16 }
  0xe4   : > { %v1287_v51 = vshll.u32 %v2974_v20, 16 }
  0xe5   : > { %v953_v14 = vpop.permute.xlu1 %952  ;;  %v951_v10 = vpop.permute.xlu0 %950  ;;  %1232 = vrot.lane.b32.xlu1 %v2965_v1, %s3472_s12  ;;  %1234 = vrot.lane.b32.xlu0 %v2966_v32, %s3472_s12 }
  0xe6   : > { %v1016_v31 = vsel %vm4047_vm5, %v953_v14, %v1015_v55  ;;  %v1013_v19 = vsel %vm4052_vm6, %v951_v10, %v1012_v37  ;;  %v4114_v41 = vld [vmem:[#allocation2 + $0x20] sm:$0xf]  ;;  %v1057_v55 = vld [vmem:[#allocation2 + $0x24] sm:$0x1]  ;;  %v1276_v10 = vor.u32 %v1275_v38, %v1271_v22  ;;  %v1160_v37 = vrot.slane %v1158_v44, 1 }
  0xe7   : > { %1017 = vst [vmem:[#allocation2 + $0x34] sm:$0x1] %v1016_v31  ;;  %1014 = vst [vmem:[#allocation2 + $0x30] sm:$0xf] %v1013_v19  ;;  %v2967_v40 = vcombine.low %v4114_v41, %v4114_v41  ;;  %v4124_v0 = vld [vmem:[#allocation2 + $0x20] sm:$0xf]  ;;  %v2975_v14 = vcombine.low %v4114_v41, %v1057_v55 }
  0xe8   : > { %v2952_v4 = vcombine.low %v4124_v0, %v4124_v0  ;;  %v1289_v31 = vrot.slane %v1287_v51, 1  ;;  %v1156_v19 = vshrl.u32 %v2959_v2, 16 }
  0xe9   : > { %v955_v18 = vpop.permute.xlu0 %954  ;;  %1236 = vrot.lane.b32.xlu1 %v2967_v40, %s3472_s12  ;;  %1342 = vrot.lane.b32.xlu0 %v2964_v29, %s3476_s23  ;;  %v2973_v29 = vcombine.low %v4094_v48, %v1055_v46  ;;  %v1042_v48 = vld [vmem:[#allocation2 + $0x24] sm:$0x1] }
  0xea   : > { %v957_v53 = vpop.permute.xlu1 %956  ;;  %v1019_v17 = vsel %vm4052_vm6, %v955_v18, %v1018_v15  ;;  %v4134_v21 = vld [vmem:[#allocation2 + $0x28] sm:$0xf]  ;;  %v2960_v18 = vcombine.low %v4124_v0, %v1042_v48  ;;  %v1161_v15 = vor.u32 %v1160_v37, %v1156_v19  ;;  %v351_v48 = vld [vmem:[#allocation3 + $0x18] sm:$0x1]  ;;  %v383_v19 = vld [vmem:[#allocation3 + $0x1c] sm:$0x1] }
  0xeb   : > { %v1022_v54 = vsel %vm4047_vm5, %v957_v53, %v1021_v58  ;;  %1020 = vst [vmem:[#allocation2 + $0x38] sm:$0xf] %v1019_v17  ;;  %v2953_v3 = vcombine.low %v4134_v21, %v4134_v21  ;;  %v4146_v52 = vld [vmem:[#allocation2 + $0x28] sm:$0xf]  ;;  %v1285_v58 = vshrl.u32 %v2974_v20, 16 }
  0xec   : > { %1023 = vst [vmem:[#allocation2 + $0x3c] sm:$0x1] %v1022_v54  ;;  %v2968_v56 = vcombine.low %v4146_v52, %v4146_v52  ;;  %v1294_v54 = vshll.u32 %v2975_v14, 16 }
  0xed   : > { %v959_v13 = vpop.permute.xlu0 %958  ;;  %1344 = vrot.lane.b32.xlu1 %v2965_v1, %s3476_s23  ;;  %1346 = vrot.lane.b32.xlu0 %v2966_v32, %s3476_s23  ;;  %v1142_v1 = vshrl.u32 %v2957_v30, 16  ;;  %v1280_v32 = vshll.u32 %v2973_v29, 16  ;;  %v1290_v41 = vor.u32 %v1289_v31, %v1285_v58 }
  0xee   : > { %v961_v36 = vpop.permute.xlu1 %960  ;;  %v1025_v62 = vsel %vm4052_vm6, %v959_v13, %v1024_v16  ;;  %v4136_v47 = vld [vmem:[#allocation2 + $0x30] sm:$0xf]  ;;  %v1044_v17 = vld [vmem:[#allocation2 + $0x34] sm:$0x1]  ;;  %v1043_v13 = vld [vmem:[#allocation2 + $0x2c] sm:$0x1] }
  0xef   : > { %v1028_v57 = vsel %vm4047_vm5, %v961_v36, %v1027_v26  ;;  %1026 = vst [vmem:[#allocation2 + $0x40] sm:$0xf] %v1025_v62  ;;  %v2954_v61 = vcombine.low %v4136_v47, %v4136_v47  ;;  %v4154_v42 = vld [vmem:[#allocation2 + $0x30] sm:$0xf]  ;;  %v1147_v12 = vor.u32 %v1146_v23, %v1142_v1  ;;  %v1282_v53 = vrot.slane %v1280_v32, 1  ;;  %v3296_v36 = vld [vmem:[%s4823_s1 + $0x8] sm:$0xff]   ;;  %vm4406_vm6 = vmand %vm333_vm8, %vm372_vm3 }
  0xf0   : > { %1029 = vst [vmem:[#allocation2 + $0x44] sm:$0x1] %v1028_v57  ;;  %v2969_v28 = vcombine.low %v4154_v42, %v4154_v42  ;;  %v1278_v26 = vshrl.u32 %v2973_v29, 16  ;;  %v2962_v16 = vcombine.low %v4136_v47, %v1044_v17  ;;  %v1058_v57 = vld [vmem:[#allocation2 + $0x2c] sm:$0x1]  ;;  %v1296_v62 = vrot.slane %v1294_v54, 1 }
  0xf1   : > { %1348 = vrot.lane.b32.xlu1 %v2967_v40, %s3476_s23  ;;  %1102 = vrot.lane.b32.xlu0 %v2952_v4, %s3474_s20  ;;  %v3295_v40 = vld [vmem:[%s4823_s1] sm:$0xff]   ;;  %v1165_v4 = vshll.u32 %v2960_v18, 16  ;;  %v3297_v47 = vld [vmem:[%s4823_s1 + $0x10] ss:$0 sps:$4 sm:$0x33]   ;;  %vm1541_vm5 = vcmask 293888  }
  0xf2   : > { %v4144_v25 = vld [vmem:[#allocation2 + $0x38] sm:$0xf]  ;;  %3121 = vmatprep.subr.bf16.mxu0 %v3295_v40  ;;  %v1283_v0 = vor.u32 %v1282_v53, %v1278_v26  ;;  %v1179_v7 = vshll.u32 %v2962_v16, 16  ;;  %v1059_v5 = vld [vmem:[#allocation2 + $0x34] sm:$0x1]  ;;  %v1177_v33 = vshrl.u32 %v2962_v16, 16 }
  0xf3   : > { %v2955_v8 = vcombine.low %v4144_v25, %v4144_v25  ;;  %v4156_v35 = vld [vmem:[#allocation2 + $0x38] sm:$0xf]  ;;  %3122 = vmatpush3.bf16.msra.mxu0 %v3295_v40  ;;  %v1167_v11 = vrot.slane %v1165_v4, 1  ;;  %v1045_v50 = vld [vmem:[#allocation2 + $0x3c] sm:$0x1]  ;;  %v2977_v63 = vcombine.low %v4154_v42, %v1059_v5  ;;  %v352_v40 = vsel %vm4227_vm10, 0, %v351_v48  ;;  %v1095_v17 = vpop.permute.xlu0 %1094 }
  0xf4   : > { %v2970_v43 = vcombine.low %v4156_v35, %v4156_v35  ;;  %3123 = vmatprep.subr.bf16.mxu0 %v3296_v36  ;;  %v2963_v30 = vcombine.low %v4144_v25, %v1045_v50  ;;  %v1181_v59 = vrot.slane %v1179_v7, 1  ;;  %353 = vst [vmem:[#allocation3 + $0x18] sm:$0x1] %v352_v40  ;;  %vm2611_vm3 = vcmask 1043456  }
  0xf5   : > { %1104 = vrot.lane.b32.xlu1 %v2953_v3, %s3474_s20  ;;  %1106 = vrot.lane.b32.xlu0 %v2954_v61, %s3474_s20  ;;  %v1292_v3 = vshrl.u32 %v2975_v14, 16  ;;  %v2961_v61 = vcombine.low %v4134_v21, %v1043_v13  ;;  %v1163_v21 = vshrl.u32 %v2960_v18, 16  ;;  %v1308_v23 = vshll.u32 %v2977_v63, 16 }
  0xf6   : > { %v4165_v27 = vld [vmem:[#allocation2 + $0x40] sm:$0xf]  ;;  %v1182_v46 = vor.u32 %v1181_v59, %v1177_v33  ;;  %v1186_v39 = vshll.u32 %v2963_v30, 16  ;;  %v1184_v42 = vshrl.u32 %v2963_v30, 16  ;;  %v1306_v14 = vshrl.u32 %v2977_v63, 16 }
  0xf7   : > { %v2971_v9 = vcombine.low %v4165_v27, %v4165_v27  ;;  %3124 = vmatpush3.bf16.msra.mxu0 %v3296_v36  ;;  %v1168_v45 = vor.u32 %v1167_v11, %v1163_v21  ;;  %v1061_v34 = vld [vmem:[#allocation2 + $0x44] sm:$0x1]  ;;  %v1170_v29 = vshrl.u32 %v2961_v61, 16  ;;  %v384_v18 = vsel %vm4236_vm11, 0, %v383_v19 }
  0xf8   : > { %3197 = vmatprep.subr.msk.bf16.mxu0 %vm1554_vm7, %v3297_v47  ;;  %v1188_v44 = vrot.slane %v1186_v39, 1  ;;  %385 = vst [vmem:[#allocation3 + $0x1c] sm:$0x1] %v384_v18  ;;  %vm2467_vm8 = vcmask 326656  }
  0xf9   : > { %1108 = vrot.lane.b32.xlu1 %v2955_v8, %s3474_s20  ;;  %1238 = vrot.lane.b32.xlu0 %v2968_v56, %s3472_s12  ;;  %v2976_v8 = vcombine.low %v4146_v52, %v1058_v57  ;;  %v1172_v52 = vshll.u32 %v2961_v61, 16  ;;  %v1191_v26 = vpop.permute.xlu0 %1190  ;;  %s3479_s20 = smov 48  }
  0xfa   : > { %v1189_v1 = vor.u32 %v1188_v44, %v1184_v42  ;;  %v1377_v63 = vsel %vm1374_vm0, %v1095_v17, %v1191_v26 }
  0xfb   : > { %v1301_v24 = vshll.u32 %v2976_v8, 16  ;;  %v1174_v2 = vrot.slane %v1172_v52, 1  ;;  %v1299_v25 = vshrl.u32 %v2976_v8, 16 }
  0xfd   : > { %1240 = vrot.lane.b32.xlu1 %v2969_v28, %s3472_s12  ;;  %1242 = vrot.lane.b32.xlu0 %v2970_v43, %s3472_s12  ;;  %v1303_v20 = vrot.slane %v1301_v24, 1 }
  0xff   : > { %v1304_v38 = vor.u32 %v1303_v20, %v1299_v25 }
 0x101   : > { %1244 = vrot.lane.b32.xlu1 %v2971_v9, %s3472_s12  ;;  %1350 = vrot.lane.b32.xlu0 %v2968_v56, %s3476_s23  ;;  %v1297_v56 = vor.u32 %v1296_v62, %v1292_v3 }
 0x105   : > { %1352 = vrot.lane.b32.xlu1 %v2969_v28, %s3476_s23  ;;  %1354 = vrot.lane.b32.xlu0 %v2970_v43, %s3476_s23  ;;  %v1060_v28 = vld [vmem:[#allocation2 + $0x3c] sm:$0x1]  ;;  %v1556_v43 = vsel %vm1554_vm7, %v3297_v47, 0 }
 0x106   : > { %3126 = vmatpush3.bf16.msra.mxu0 %v1556_v43 }
 0x109   : > { %1356 = vrot.lane.b32.xlu1 %v2971_v9, %s3476_s23  ;;  %1194 = vrot.lane.b32.xlu0 %v1154_v60, %s3475_s22  ;;  %v2978_v9 = vcombine.low %v4156_v35, %v1060_v28  ;;  %v1175_v35 = vor.u32 %v1174_v2, %v1170_v29  ;;  %v2979_v60 = vcombine.low %v4165_v27, %v1061_v34  ;;  %s3481_s23 = smov 64  }
 0x10b   : > { %v1315_v49 = vshll.u32 %v2978_v9, 16  ;;  %v1313_v55 = vshrl.u32 %v2978_v9, 16  ;;  %v1322_v32 = vshll.u32 %v2979_v60, 16  ;;  %v1320_v37 = vshrl.u32 %v2979_v60, 16 }
 0x10d   : > { %1192 = vrot.lane.b32.xlu1 %v1147_v12, %s3475_s22  ;;  %1326 = vrot.lane.b32.xlu0 %v1276_v10, %s3477_s29  ;;  %v1317_v51 = vrot.slane %v1315_v49, 1  ;;  %v1310_v12 = vrot.slane %v1308_v23, 1  ;;  %v1324_v27 = vrot.slane %v1322_v32, 1  ;;  %v1400_v49 = vsel %vm1399_vm12, %v1377_v63, %v1191_v26 }
 0x10f   : > { %v1318_v22 = vor.u32 %v1317_v51, %v1313_v55  ;;  %v1325_v31 = vor.u32 %v1324_v27, %v1320_v37 }
 0x111   : > { %1196 = vrot.lane.b32.xlu1 %v1161_v15, %s3475_s22  ;;  %1330 = vrot.lane.b32.xlu0 %v1290_v41, %s3477_s29  ;;  %v342_v15 = vld [vmem:[#allocation3] sm:$0x1] }
 0x112   : > { %v343_v6 = vsel %vm4227_vm10, 0, %v342_v15 }
 0x113   : > { %344 = vst [vmem:[#allocation3] sm:$0x1] %v343_v6 }
 0x115   : > { %1328 = vrot.lane.b32.xlu1 %v1283_v0, %s3477_s29  ;;  %1358 = vrot.lane.b32.xlu0 %v1276_v10, %s3478_s11  ;;  %v1311_v10 = vor.u32 %v1310_v12, %v1306_v14 }
 0x119   : > { %1332 = vrot.lane.b32.xlu1 %v1297_v56, %s3477_s29  ;;  %1362 = vrot.lane.b32.xlu0 %v1290_v41, %s3478_s11  ;;  %v369_v41 = vld [vmem:[#allocation3 + $0x48] sm:$0x1] }
 0x11a   : > { %v370_v54 = vsel %vm4227_vm10, 0, %v369_v41 }
 0x11b   : > { %371 = vst [vmem:[#allocation3 + $0x48] sm:$0x1] %v370_v54 }
 0x11d   : > { %1360 = vrot.lane.b32.xlu1 %v1283_v0, %s3478_s11  ;;  %1198 = vrot.lane.b32.xlu0 %v1168_v45, %s3475_s22 }
 0x121   : > { %1364 = vrot.lane.b32.xlu1 %v1297_v56, %s3478_s11  ;;  %1202 = vrot.lane.b32.xlu0 %v1182_v46, %s3475_s22 }
 0x125   : > { %1200 = vrot.lane.b32.xlu1 %v1175_v35, %s3475_s22  ;;  %1334 = vrot.lane.b32.xlu0 %v1304_v38, %s3477_s29 }
 0x129   : > { %1204 = vrot.lane.b32.xlu1 %v1189_v1, %s3475_s22  ;;  %1338 = vrot.lane.b32.xlu0 %v1318_v22, %s3477_s29  ;;  %s3480_s22 = smov 56  }
 0x12d   : > { %1336 = vrot.lane.b32.xlu1 %v1311_v10, %s3477_s29  ;;  %1366 = vrot.lane.b32.xlu0 %v1304_v38, %s3478_s11 }
 0x131   : > { %1340 = vrot.lane.b32.xlu1 %v1325_v31, %s3477_s29  ;;  %1370 = vrot.lane.b32.xlu0 %v1318_v22, %s3478_s11 }
 0x135   : > { %1368 = vrot.lane.b32.xlu1 %v1311_v10, %s3478_s11 }
 0x139   : > { %1372 = vrot.lane.b32.xlu1 %v1325_v31, %s3478_s11  ;;  %s3484_s11 = smov 32  }
 0x14b   : > { %v1097_v36 = vpop.permute.xlu1 %1096 }
 0x14f   : > { %v1099_v13 = vpop.permute.xlu0 %1098 }
 0x153   : > { %v1101_v16 = vpop.permute.xlu1 %1100  ;;  %v1231_v57 = vpop.permute.xlu0 %1230 }
 0x154   : > { %v1410_v29 = vsel %vm1408_vm13, %v1400_v49, %v1231_v57 }
 0x157   : > { %v1233_v0 = vpop.permute.xlu1 %1232  ;;  %v1235_v62 = vpop.permute.xlu0 %1234 }
 0x15b   : > { %v1237_v4 = vpop.permute.xlu1 %1236  ;;  %v1343_v3 = vpop.permute.xlu0 %1342 }
 0x15f   : > { %v1345_v61 = vpop.permute.xlu1 %1344  ;;  %v1347_v8 = vpop.permute.xlu0 %1346 }
 0x163   : > { %v4248_v47 = vpop.permute.xlu1 %1348  ;;  %v4250_v56 = vpop.permute.xlu0 %1102 }
 0x167   : > { %v4252_v11 = vpop.permute.xlu1 %1104  ;;  %v4254_v7 = vpop.permute.xlu0 %1106 }
 0x16b   : > { %v4256_v50 = vpop.permute.xlu1 %1108  ;;  %v4258_v28 = vpop.permute.xlu0 %1238 }
 0x16f   : > { %v4260_v43 = vpop.permute.xlu1 %1240  ;;  %v4262_v21 = vpop.permute.xlu0 %1242 }
 0x173   : > { %v4264_v52 = vpop.permute.xlu1 %1244  ;;  %v4266_v24 = vpop.permute.xlu0 %1350 }
 0x177   : > { %v4268_v30 = vpop.permute.xlu1 %1352  ;;  %v4270_v5 = vpop.permute.xlu0 %1354 }
 0x17b   : > { %v4272_v9 = vpop.permute.xlu1 %1356  ;;  %v1195_v45 = vpop.permute.xlu0 %1194 }
 0x17c   : > { %v1383_v39 = vsel %vm1374_vm0, %v1099_v13, %v1195_v45 }
 0x17d   : > { %v1402_v35 = vsel %vm1399_vm12, %v1383_v39, %v1195_v45 }
 0x17e   : > { %v1414_v1 = vsel %vm1408_vm13, %v1402_v35, %v1235_v62 }
 0x17f   : > { %v1193_v59 = vpop.permute.xlu1 %1192  ;;  %v1327_v33 = vpop.permute.xlu0 %1326 }
 0x180   : > { %v1380_v2 = vsel %vm1374_vm0, %v1097_v36, %v1193_v59  ;;  %v1427_v23 = vsel %vm1425_vm14, %v1410_v29, %v1327_v33 }
 0x181   : > { %v1401_v34 = vsel %vm1399_vm12, %v1380_v2, %v1193_v59  ;;  %v1443_v55 = vsel %vm1442_vm15, %v1427_v23, %v1327_v33 }
 0x182   : > { %v1412_v44 = vsel %vm1408_vm13, %v1401_v34, %v1233_v0  ;;  %v1453_v27 = vsel %vm1451_vm1, %v1443_v55, %v1343_v3 }
 0x183   : > { %v1197_v46 = vpop.permute.xlu1 %1196  ;;  %v1331_v20 = vpop.permute.xlu0 %1330 }
 0x184   : > { %v1386_v25 = vsel %vm1374_vm0, %v1101_v16, %v1197_v46  ;;  %v1431_v22 = vsel %vm1425_vm14, %v1414_v1, %v1331_v20 }
 0x185   : > { %v1403_v51 = vsel %vm1399_vm12, %v1386_v25, %v1197_v46  ;;  %v1445_v31 = vsel %vm1442_vm15, %v1431_v22, %v1331_v20 }
 0x186   : > { %v1416_v10 = vsel %vm1408_vm13, %v1403_v51, %v1237_v4  ;;  %v1457_v54 = vsel %vm1451_vm1, %v1445_v31, %v1347_v8 }
 0x187   : > { %v1329_v60 = vpop.permute.xlu1 %1328  ;;  %v1359_v38 = vpop.permute.xlu0 %1358 }
 0x188   : > { %v1429_v42 = vsel %vm1425_vm14, %v1412_v44, %v1329_v60  ;;  %v1470_v48 = vsel %vm1468_vm2, %v1453_v27, %v1359_v38 }
 0x189   : > { %v1444_v14 = vsel %vm1442_vm15, %v1429_v42, %v1329_v60  ;;  %v1486_v6 = vsel %vm1485_vm4, %v1470_v48, %v1359_v38 }
 0x18a   : > { %v1455_v19 = vsel %vm1451_vm1, %v1444_v14, %v1345_v61 }
 0x18b   : > { %v1333_v12 = vpop.permute.xlu1 %1332  ;;  %v1363_v32 = vpop.permute.xlu0 %1362 }
 0x18c   : > { %v1433_v37 = vsel %vm1425_vm14, %v1416_v10, %v1333_v12  ;;  %v1474_v26 = vsel %vm1468_vm2, %v1457_v54, %v1363_v32 }
 0x18d   : > { %v1446_v15 = vsel %vm1442_vm15, %v1433_v37, %v1333_v12  ;;  %v1488_v62 = vsel %vm1485_vm4, %v1474_v26, %v1363_v32  ;;  %v386_v26 = vld [vmem:[#allocation3 + $0x24] sm:$0x1] }
 0x18e   : > { %v1459_v13 = vsel %vm1451_vm1, %v1446_v15, %v4248_v47  ;;  %v345_v15 = vld [vmem:[#allocation3 + $0x8] sm:$0x1] }
 0x18f   : > { %v1361_v40 = vpop.permute.xlu1 %1360  ;;  %v1199_v18 = vpop.permute.xlu0 %1198 }
 0x190   : > { %v1472_v41 = vsel %vm1468_vm2, %v1455_v19, %v1361_v40  ;;  %v1389_v45 = vsel %vm1374_vm0, %v4250_v56, %v1199_v18 }
 0x191   : > { %v1487_v17 = vsel %vm1485_vm4, %v1472_v41, %v1361_v40  ;;  %v1404_v59 = vsel %vm1399_vm12, %v1389_v45, %v1199_v18  ;;  %v401_v18 = vld [vmem:[#allocation3 + $0x4c] sm:$0x1] }
 0x192   : > { %v2981_v36 = vcombine.low %v1486_v6, %v1487_v17  ;;  %v1418_v20 = vsel %vm1408_vm13, %v1404_v59, %v4258_v28  ;;  %v377_v41 = vld [vmem:[#allocation3 + $0xc] sm:$0x1]  ;;  %v346_v6 = vsel %vm4227_vm10, 0, %v345_v15  ;;  %v354_v17 = vld [vmem:[#allocation3 + $0x20] sm:$0x1] }
 0x193   : > { %v1365_v16 = vpop.permute.xlu1 %1364  ;;  %v1203_v57 = vpop.permute.xlu0 %1202  ;;  %v378_v54 = vsel %vm4236_vm11, 0, %v377_v41  ;;  %347 = vst [vmem:[#allocation3 + $0x8] sm:$0x1] %v346_v6 }
 0x194   : > { %v1476_v0 = vsel %vm1468_vm2, %v1459_v13, %v1365_v16  ;;  %3127 = vmatprep.mubr.msk.bf16.mxu0 %vm1541_vm5, %v2981_v36  ;;  %v1395_v2 = vsel %vm1374_vm0, %v4254_v7, %v1203_v57  ;;  %379 = vst [vmem:[#allocation3 + $0xc] sm:$0x1] %v378_v54  ;;  %v355_v36 = vsel %vm4227_vm10, 0, %v354_v17  ;;  %v387_v13 = vsel %vm4236_vm11, 0, %v386_v26  ;;  %v1758_v54 = vld [vmem:[#allocation3 + $0x18] sm:$0xf] }
 0x195   : > { %v1489_v4 = vsel %vm1485_vm4, %v1476_v0, %v1365_v16  ;;  %v1406_v39 = vsel %vm1399_vm12, %v1395_v2, %v1203_v57  ;;  %v348_v16 = vld [vmem:[#allocation3 + $0x10] sm:$0x1]  ;;  %v4367_v57 = vld [vmem:[#allocation3] sm:$0xf]  ;;  %356 = vst [vmem:[#allocation3 + $0x20] sm:$0x1] %v355_v36 }
 0x196   : > { %v2982_v3 = vcombine.low %v1488_v62, %v1489_v4  ;;  %v1422_v28 = vsel %vm1408_vm13, %v1406_v39, %v4262_v21  ;;  %388 = vst [vmem:[#allocation3 + $0x24] sm:$0x1] %v387_v13  ;;  %v349_v0 = vsel %vm4227_vm10, 0, %v348_v16  ;;  %v380_v62 = vld [vmem:[#allocation3 + $0x14] sm:$0x1] }
 0x197   : > { %v1201_v61 = vpop.permute.xlu1 %1200  ;;  %v1335_v8 = vpop.permute.xlu0 %1334  ;;  %v1850_v4 = vld [vmem:[#allocation3 + $0x48] sm:$0xf]  ;;  %350 = vst [vmem:[#allocation3 + $0x10] sm:$0x1] %v349_v0  ;;  %v1761_v17 = vld [vmem:[#allocation3 + $0x1c] sm:$0x1] }
 0x198   : > { %3128 = vmatmul.mubr.msk.bf16.vlgmr.msra.gmra.mrb[0].mxu0 %vm1541_vm5, %v2982_v3  ;;  %v1392_v47 = vsel %vm1374_vm0, %v4252_v11, %v1201_v61  ;;  %v1435_v49 = vsel %vm1425_vm14, %v1418_v20, %v1335_v8  ;;  %v381_v3 = vsel %vm4236_vm11, 0, %v380_v62  ;;  %v3047_v59 = vcombine.low %v1850_v4, %v1850_v4  ;;  %v1810_v20 = vld [vmem:[#allocation3] sm:$0xe] }
 0x199   : > { %v1405_v46 = vsel %vm1399_vm12, %v1392_v47, %v1201_v61  ;;  %v1447_v35 = vsel %vm1442_vm15, %v1435_v49, %v1335_v8  ;;  %382 = vst [vmem:[#allocation3 + $0x14] sm:$0x1] %v381_v3 }
 0x19a   : > { %v1420_v34 = vsel %vm1408_vm13, %v1405_v46, %v4260_v43  ;;  %v1461_v43 = vsel %vm1451_vm1, %v1447_v35, %v4266_v24  ;;  %2249 = vrot.lane.b32.xlu1 %v3047_v59, %s3479_s20  ;;  %v1746_v0 = vld [vmem:[#allocation3 + $0x8] sm:$0xf] }
 0x19b   : > { %v1205_v33 = vpop.permute.xlu1 %1204  ;;  %v1339_v63 = vpop.permute.xlu0 %1338 }
 0x19c   : > { %v1398_v56 = vsel %vm1374_vm0, %v4256_v50, %v1205_v33  ;;  %v1439_v50 = vsel %vm1425_vm14, %v1422_v28, %v1339_v63  ;;  %v363_v28 = vld [vmem:[#allocation3 + $0x38] sm:$0x1] }
 0x19d   : > { %v1407_v29 = vsel %vm1399_vm12, %v1398_v56, %v1205_v33  ;;  %v1449_v51 = vsel %vm1442_vm15, %v1439_v50, %v1339_v63  ;;  %v1866_v56 = vld [vmem:[#allocation3 + $0x48] sm:$0xe]  ;;  %v395_v50 = vld [vmem:[#allocation3 + $0x3c] sm:$0x1] }
 0x19e   : > { %v1424_v38 = vsel %vm1408_vm13, %v1407_v29, %v4264_v52  ;;  %v1465_v24 = vsel %vm1451_vm1, %v1449_v51, %v4270_v5  ;;  %v374_v5 = vld [vmem:[#allocation3 + $0x4] sm:$0x1] }
 0x19f   : > { %v1337_v11 = vpop.permute.xlu1 %1336  ;;  %v1367_v25 = vpop.permute.xlu0 %1366  ;;  %v375_v40 = vsel %vm4236_vm11, 0, %v374_v5 }
 0x1a0   : > { %v1437_v7 = vsel %vm1425_vm14, %v1420_v34, %v1337_v11  ;;  %v1478_v42 = vsel %vm1468_vm2, %v1461_v43, %v1367_v25  ;;  %376 = vst [vmem:[#allocation3 + $0x4] sm:$0x1] %v375_v40  ;;  %v389_v43 = vld [vmem:[#allocation3 + $0x2c] sm:$0x1] }
 0x1a1   : > { %v1448_v60 = vsel %vm1442_vm15, %v1437_v7, %v1337_v11  ;;  %v1490_v52 = vsel %vm1485_vm4, %v1478_v42, %v1367_v25  ;;  %v390_v51 = vsel %vm4236_vm11, 0, %v389_v43  ;;  %v366_v42 = vld [vmem:[#allocation3 + $0x40] sm:$0x1] }
 0x1a2   : > { %v1463_v21 = vsel %vm1451_vm1, %v1448_v60, %v4268_v30  ;;  %v396_v60 = vsel %vm4236_vm11, 0, %v395_v50  ;;  %391 = vst [vmem:[#allocation3 + $0x2c] sm:$0x1] %v390_v51 }
 0x1a3   : > { %v1341_v23 = vpop.permute.xlu1 %1340  ;;  %v1371_v55 = vpop.permute.xlu0 %1370  ;;  %397 = vst [vmem:[#allocation3 + $0x3c] sm:$0x1] %v396_v60 }
 0x1a4   : > { %v1441_v44 = vsel %vm1425_vm14, %v1424_v38, %v1341_v23  ;;  %v1482_v14 = vsel %vm1468_vm2, %v1465_v24, %v1371_v55  ;;  %v357_v38 = vld [vmem:[#allocation3 + $0x28] sm:$0x1] }
 0x1a5   : > { %v1450_v22 = vsel %vm1442_vm15, %v1441_v44, %v1341_v23  ;;  %v1492_v31 = vsel %vm1485_vm4, %v1482_v14, %v1371_v55  ;;  %v364_v23 = vsel %vm4227_vm10, 0, %v363_v28  ;;  %v358_v44 = vsel %vm4227_vm10, 0, %v357_v38  ;;  %v398_v55 = vld [vmem:[#allocation3 + $0x44] sm:$0x1] }
 0x1a6   : > { %v1467_v27 = vsel %vm1451_vm1, %v1450_v22, %v4272_v9  ;;  %v402_v9 = vsel %vm4236_vm11, 0, %v401_v18  ;;  %365 = vst [vmem:[#allocation3 + $0x38] sm:$0x1] %v364_v23  ;;  %359 = vst [vmem:[#allocation3 + $0x28] sm:$0x1] %v358_v44 }
 0x1a7   : > { %v1369_v1 = vpop.permute.xlu1 %1368  ;;  %403 = vst [vmem:[#allocation3 + $0x4c] sm:$0x1] %v402_v9  ;;  %v1802_v8 = vld [vmem:[#allocation3 + $0x4] sm:$0x1]  ;;  %v360_v22 = vld [vmem:[#allocation3 + $0x30] sm:$0x1] }
 0x1a8   : > { %v1480_v12 = vsel %vm1468_vm2, %v1463_v21, %v1369_v1  ;;  %v3000_v47 = vcombine.low %v4367_v57, %v1802_v8  ;;  %v3008_v11 = vcombine.low %v1810_v20, %v1802_v8  ;;  %v367_v21 = vsel %vm4227_vm10, 0, %v366_v42  ;;  %v1749_v8 = vld [vmem:[#allocation3 + $0xc] sm:$0x1] }
 0x1a9   : > { %v1491_v32 = vsel %vm1485_vm4, %v1480_v12, %v1369_v1  ;;  %v399_v1 = vsel %vm4236_vm11, 0, %v398_v55  ;;  %368 = vst [vmem:[#allocation3 + $0x40] sm:$0x1] %v367_v21  ;;  %v361_v12 = vsel %vm4227_vm10, 0, %v360_v22 }
 0x1aa   : > { %v2983_v10 = vcombine.low %v1490_v52, %v1491_v32  ;;  %v1908_v33 = vshrl.u32 %v3000_v47, 16  ;;  %v1910_v63 = vshll.u32 %v3000_v47, 16  ;;  %v2003_v25 = vrot.slane %v3008_v11, 1  ;;  %400 = vst [vmem:[#allocation3 + $0x44] sm:$0x1] %v399_v1 }
 0x1ab   : > { %v1373_v37 = vpop.permute.xlu1 %1372  ;;  %v392_v52 = vld [vmem:[#allocation3 + $0x34] sm:$0x1]  ;;  %362 = vst [vmem:[#allocation3 + $0x30] sm:$0x1] %v361_v12  ;;  %v4398_v32 = vld [vmem:[%s4824_s2] ss:$0 sm:$0xff] }
 0x1ac   : > { %v1484_v30 = vsel %vm1468_vm2, %v1467_v27, %v1373_v37  ;;  %3131 = vmatprep.mubr.msk.bf16.mxu0 %vm1541_vm5, %v2983_v10  ;;  %v1912_v39 = vrot.slane %v1910_v63, 1  ;;  %v393_v24 = vsel %vm4236_vm11, 0, %v392_v52  ;;  %vm2518_vm11 = vcmask 523264  }
 0x1ad   : > { %v1493_v48 = vsel %vm1485_vm4, %v1484_v30, %v1373_v37  ;;  %394 = vst [vmem:[#allocation3 + $0x34] sm:$0x1] %v393_v24 }
 0x1ae   : > { %v2984_v19 = vcombine.low %v1492_v31, %v1493_v48  ;;  %v1858_v61 = vld [vmem:[#allocation3 + $0x4c] sm:$0x1]  ;;  %v1913_v29 = vor.u32 %v1912_v39, %v1908_v33 }
 0x1af   : > { %v3055_v45 = vcombine.low %v1850_v4, %v1858_v61  ;;  %v3063_v34 = vcombine.low %v1866_v56, %v1858_v61  ;;  %v1767_v56 = vld [vmem:[#allocation3 + $0x24] sm:$0x1] }
 0x1b0   : > { %3132 = vmatmul.mubr.msk.bf16.gmra.mrb[4].mxu0 %vm1541_vm5, %v2984_v19  ;;  %1963 = vrot.lane.b32.xlu0 %v1913_v29, %s3472_s12 }
 0x1b1   : > { %v2327_v2 = vshll.u32 %v3055_v45, 16  ;;  %v2325_v46 = vshrl.u32 %v3055_v45, 16  ;;  %v2378_v35 = vrot.slane %v3063_v34, 1 }
 0x1b3   : > { %v2329_v49 = vrot.slane %v2327_v2, 1  ;;  %v1764_v2 = vld [vmem:[#allocation3 + $0x20] sm:$0xf] }
 0x1b4   : > { %2011 = vrot.lane.b32.xlu0 %v2003_v25, %s3477_s29  ;;  %v1752_v25 = vld [vmem:[#allocation3 + $0x10] sm:$0xf] }
 0x1b5   : > { %v2330_v7 = vor.u32 %v2329_v49, %v2325_v46 }
 0x1b7   : > { %2345 = vrot.lane.b32.xlu1 %v2330_v7, %s3480_s22 }
 0x1bb   : > { %2393 = vrot.lane.b32.xlu1 %v2378_v35, %s3481_s23  ;;  %v1755_v35 = vld [vmem:[#allocation3 + $0x14] sm:$0x1] }
 0x26b   : > { %v3129_v14 = vpop.f32.mrb[0].mxu0 }
 0x26c   : > { %v1601_v10 = vadd.f32 %v3129_v14, %v4398_v32  ;;  %v1592_v27 = vpop.f32.mrb[1].mxu0 }
 0x26d   : > { %v1593_v37 = vadd.f32 %v4398_v32, %v1592_v27  ;;  %v3130_v30 = vpop.f32.mrb[2].mxu0 }
 0x26e   : > { %v1625_v31 = vmax.f32 %v1601_v10, 0.0  ;;  %v1604_v48 = vadd.f32 %v3130_v30, %v4398_v32  ;;  %v1595_v19 = vpop.f32.mrb[3].mxu0 }
 0x26f   : > { %v1623_v5 = vmax.f32 %v1593_v37, 0.0  ;;  %v1596_v53 = vadd.f32 %v4398_v32, %v1595_v19 }
 0x270   : > { %v3094_v40 = vpack.c.bf16 %v1625_v31, %v1625_v31  ;;  %v1626_v18 = vmax.f32 %v1604_v48, 0.0 }
 0x271   : > { %v3092_v9 = vpack.c.bf16 %v1623_v5, %v1623_v5  ;;  %v1624_v15 = vmax.f32 %v1596_v53, 0.0 }
 0x272   : > { %v1680_v41 = vshrl.u32 %v3094_v40, 16  ;;  %v3095_v6 = vpack.c.bf16 %v1626_v18, %v1626_v18  ;;  %v1683_v16 = vshll.u32 %v3094_v40, 16 }
 0x273   : > { %v1664_v26 = vshrl.u32 %v3092_v9, 16  ;;  %v3093_v36 = vpack.c.bf16 %v1624_v15, %v1624_v15  ;;  %v1667_v61 = vshll.u32 %v3092_v9, 16 }
 0x274   : > { %v1682_v13 = vrot.slane %v1680_v41, 7  ;;  %v1688_v62 = vshrl.u32 %v3095_v6, 16  ;;  %v1691_v63 = vshll.u32 %v3095_v6, 16 }
 0x275   : > { %v1666_v3 = vrot.slane %v1664_v26, 7  ;;  %v1672_v45 = vshrl.u32 %v3093_v36, 16  ;;  %v1675_v49 = vshll.u32 %v3093_v36, 16 }
 0x276   : > { %v1685_v47 = vor.u32 %v1683_v16, %v1682_v13  ;;  %v1686_v59 = vrot.slane %v1682_v13, 4  ;;  %v1690_v33 = vrot.slane %v1688_v62, 7 }
 0x277   : > { %v1669_v46 = vor.u32 %v1667_v61, %v1666_v3  ;;  %v1670_v20 = vrot.slane %v1666_v3, 4  ;;  %v1674_v39 = vrot.slane %v1672_v45, 7 }
 0x278   : > { %v1759_v11 = vsel %vm4406_vm6, %v1685_v47, %v1758_v54  ;;  %v1762_v34 = vsel %vm4227_vm10, %v1686_v59, %v1761_v17  ;;  %v1693_v29 = vor.u32 %v1691_v63, %v1690_v33  ;;  %v1694_v7 = vrot.slane %v1690_v33, 4  ;;  %v1782_v47 = vld [vmem:[#allocation3 + $0x38] sm:$0xf] }
 0x279   : > { %1760 = vst [vmem:[#allocation3 + $0x18] sm:$0xf] %v1759_v11  ;;  %1763 = vst [vmem:[#allocation3 + $0x1c] sm:$0x1] %v1762_v34  ;;  %v1747_v28 = vsel %vm4406_vm6, %v1669_v46, %v1746_v0  ;;  %v1750_v50 = vsel %vm4227_vm10, %v1670_v20, %v1749_v8  ;;  %v1677_v23 = vor.u32 %v1675_v49, %v1674_v39  ;;  %v1678_v60 = vrot.slane %v1674_v39, 4 }
 0x27a   : > { %1748 = vst [vmem:[#allocation3 + $0x8] sm:$0xf] %v1747_v28  ;;  %1751 = vst [vmem:[#allocation3 + $0xc] sm:$0x1] %v1750_v50  ;;  %v1765_v38 = vsel %vm4406_vm6, %v1693_v29, %v1764_v2  ;;  %v1768_v43 = vsel %vm4227_vm10, %v1694_v7, %v1767_v56  ;;  %v1770_v46 = vld [vmem:[#allocation3 + $0x28] sm:$0xf] }
 0x27b   : > { %1766 = vst [vmem:[#allocation3 + $0x20] sm:$0xf] %v1765_v38  ;;  %1769 = vst [vmem:[#allocation3 + $0x24] sm:$0x1] %v1768_v43  ;;  %v1753_v44 = vsel %vm4406_vm6, %v1677_v23, %v1752_v25  ;;  %v1756_v51 = vsel %vm4227_vm10, %v1678_v60, %v1755_v35  ;;  %v1773_v20 = vld [vmem:[#allocation3 + $0x2c] sm:$0x1] }
 0x27c   : > { %1754 = vst [vmem:[#allocation3 + $0x10] sm:$0xf] %v1753_v44  ;;  %1757 = vst [vmem:[#allocation3 + $0x14] sm:$0x1] %v1756_v51  ;;  %v1788_v34 = vld [vmem:[#allocation3 + $0x40] sm:$0xf] }
 0x27d   : > { %v1791_v29 = vld [vmem:[#allocation3 + $0x44] sm:$0x1]  ;;  %v1776_v60 = vld [vmem:[#allocation3 + $0x30] sm:$0xf] }
 0x280   : > { %v4426_v42 = vld [vmem:[#allocation3 + $0x18] sm:$0xf]  ;;  %v4434_v22 = vld [vmem:[#allocation3 + $0x1c] sm:$0x1] }
 0x281   : > { %v4428_v55 = vld [vmem:[#allocation3 + $0x18] sm:$0xf]  ;;  %v3041_v21 = vcombine.low %v4426_v42, %v4426_v42  ;;  %v4437_v24 = vld [vmem:[#allocation3 + $0x8] sm:$0xf]  ;;  %v4439_v14 = vld [vmem:[#allocation3 + $0x1c] sm:$0x1] }
 0x282   : > { %v3018_v1 = vcombine.low %v4428_v55, %v4428_v55  ;;  %v1813_v12 = vld [vmem:[#allocation3 + $0x18] sm:$0xe]  ;;  %v3016_v5 = vcombine.low %v4437_v24, %v4437_v24  ;;  %v4447_v53 = vld [vmem:[#allocation3 + $0x20] sm:$0xf]  ;;  %v4451_v41 = vld [vmem:[#allocation3 + $0xc] sm:$0x1] }
 0x283   : > { %v3011_v52 = vcombine.low %v1813_v12, %v4434_v22  ;;  %2237 = vrot.lane.b32.xlu1 %v3041_v21, %s3479_s20  ;;  %v3133_v10 = vpop.f32.mrb[4].mxu0  ;;  %v1836_v27 = vld [vmem:[#allocation3 + $0x18] sm:$0xe]  ;;  %v1811_v6 = vld [vmem:[#allocation3 + $0x8] sm:$0xe]  ;;  %v3019_v13 = vcombine.low %v4447_v53, %v4447_v53 }
 0x284   : > { %2055 = vrot.lane.b32.xlu0 %v3018_v1, %s3482_s9  ;;  %v1617_v37 = vadd.f32 %v3133_v10, %v4398_v32  ;;  %v1608_v30 = vpop.f32.mrb[5].mxu0  ;;  %v3034_v40 = vcombine.low %v1836_v27, %v4439_v14  ;;  %v4458_v3 = vld [vmem:[#allocation3 + $0x20] sm:$0xf]  ;;  %v3009_v61 = vcombine.low %v1811_v6, %v4451_v41  ;;  %v1779_v21 = vld [vmem:[#allocation3 + $0x34] sm:$0x1] }
 0x285   : > { %v1609_v31 = vadd.f32 %v4398_v32, %v1608_v30  ;;  %v3134_v48 = vpop.f32.mrb[6].mxu0  ;;  %v2006_v19 = vrot.slane %v3011_v52, 1  ;;  %v3042_v39 = vcombine.low %v4458_v3, %v4458_v3  ;;  %v4471_v27 = vld [vmem:[#allocation3 + $0x18] sm:$0xf]  ;;  %v1835_v58 = vld [vmem:[#allocation3 + $0x10] sm:$0xe] }
 0x286   : > { %v1629_v18 = vmax.f32 %v1617_v37, 0.0  ;;  %v1620_v9 = vadd.f32 %v3134_v48, %v4398_v32  ;;  %v1611_v15 = vpop.f32.mrb[7].mxu0  ;;  %v2189_v62 = vrot.slane %v3034_v40, 1  ;;  %v2004_v25 = vrot.slane %v3009_v61, 1  ;;  %v1826_v37 = vld [vmem:[#allocation3 + $0xc] sm:$0x1] }
 0x287   : > { %v1627_v54 = vmax.f32 %v1609_v31, 0.0  ;;  %v1612_v17 = vadd.f32 %v4398_v32, %v1611_v15  ;;  %2017 = vrot.lane.b32.xlu1 %v2006_v19, %s3477_s29  ;;  %v1785_v32 = vld [vmem:[#allocation3 + $0x3c] sm:$0x1]  ;;  %v4477_v40 = vld [vmem:[#allocation3 + $0x10] sm:$0xf] }
 0x288   : > { %2051 = vrot.lane.b32.xlu0 %v3016_v5, %s3482_s9  ;;  %v3098_v26 = vpack.c.bf16 %v1629_v18, %v1629_v18  ;;  %v1630_v36 = vmax.f32 %v1620_v9, 0.0  ;;  %v1834_v5 = vld [vmem:[#allocation3 + $0x8] sm:$0xe]  ;;  %v4494_v61 = vld [vmem:[#allocation3 + $0x10] sm:$0xf] }
 0x289   : > { %v3096_v16 = vpack.c.bf16 %v1627_v54, %v1627_v54  ;;  %v1628_v0 = vmax.f32 %v1612_v17, 0.0  ;;  %v1829_v54 = vld [vmem:[#allocation3 + $0x24] sm:$0x1]  ;;  %v1837_v17 = vld [vmem:[#allocation3 + $0x20] sm:$0xe] }
 0x28a   : > { %v1712_v8 = vshrl.u32 %v3098_v26, 16  ;;  %v3099_v45 = vpack.c.bf16 %v1630_v36, %v1630_v36  ;;  %v1715_v2 = vshll.u32 %v3098_v26, 16  ;;  %v3003_v26 = vcombine.low %v4471_v27, %v4434_v22 }
 0x28b   : > { %v1696_v59 = vshrl.u32 %v3096_v16, 16  ;;  %v3097_v33 = vpack.c.bf16 %v1628_v0, %v1628_v0  ;;  %2057 = vrot.lane.b32.xlu1 %v3019_v13, %s3482_s9  ;;  %v1699_v11 = vshll.u32 %v3096_v16, 16  ;;  %v3032_v36 = vcombine.low %v1834_v5, %v1826_v37  ;;  %v4491_v16 = vld [vmem:[#allocation3 + $0x1c] sm:$0x1] }
 0x28c   : > { %2199 = vrot.lane.b32.xlu0 %v2189_v62, %s3483_s8  ;;  %v1714_v63 = vrot.slane %v1712_v8, 7  ;;  %v1720_v56 = vshrl.u32 %v3099_v45, 16  ;;  %v1723_v23 = vshll.u32 %v3099_v45, 16  ;;  %v3017_v13 = vcombine.low %v4477_v40, %v4477_v40  ;;  %v1827_v62 = vld [vmem:[#allocation3 + $0x14] sm:$0x1] }
 0x28d   : > { %v1698_v49 = vrot.slane %v1696_v59, 7  ;;  %v1704_v7 = vshrl.u32 %v3097_v33, 16  ;;  %v1707_v51 = vshll.u32 %v3097_v33, 16  ;;  %v2187_v0 = vrot.slane %v3032_v36, 1  ;;  %v1806_v8 = vld [vmem:[#allocation3 + $0x24] sm:$0x1] }
 0x28e   : > { %v1717_v35 = vor.u32 %v1715_v2, %v1714_v63  ;;  %v1718_v28 = vrot.slane %v1714_v63, 4  ;;  %v1722_v50 = vrot.slane %v1720_v56, 7  ;;  %v3035_v4 = vcombine.low %v1837_v17, %v1829_v54  ;;  %v1814_v45 = vld [vmem:[#allocation3 + $0x20] sm:$0xe]  ;;  %v4499_v59 = vld [vmem:[#allocation3 + $0x8] sm:$0xf] }
 0x28f   : > { %v1701_v38 = vor.u32 %v1699_v11, %v1698_v49  ;;  %v1702_v43 = vrot.slane %v1698_v49, 4  ;;  %v1706_v44 = vrot.slane %v1704_v7, 7  ;;  %2013 = vrot.lane.b32.xlu1 %v2004_v25, %s3477_s29  ;;  %v1931_v22 = vshll.u32 %v3003_v26, 16  ;;  %v1812_v56 = vld [vmem:[#allocation3 + $0x10] sm:$0xe] }
 0x290   : > { %2239 = vrot.lane.b32.xlu0 %v3042_v39, %s3479_s20  ;;  %v1783_v1 = vsel %vm4406_vm6, %v1717_v35, %v1782_v47  ;;  %v1786_v12 = vsel %vm4227_vm10, %v1718_v28, %v1785_v32  ;;  %v1725_v52 = vor.u32 %v1723_v23, %v1722_v50  ;;  %v1726_v10 = vrot.slane %v1722_v50, 4  ;;  %v4511_v25 = vld [vmem:[#allocation3 + $0x20] sm:$0xf]  ;;  %v4531_v36 = vld [vmem:[#allocation3 + $0x14] sm:$0x1] }
 0x291   : > { %1784 = vst [vmem:[#allocation3 + $0x38] sm:$0xf] %v1783_v1  ;;  %1787 = vst [vmem:[#allocation3 + $0x3c] sm:$0x1] %v1786_v12  ;;  %v1771_v30 = vsel %vm4406_vm6, %v1701_v38, %v1770_v46  ;;  %v1774_v31 = vsel %vm4227_vm10, %v1702_v43, %v1773_v20  ;;  %v1709_v48 = vor.u32 %v1707_v51, %v1706_v44  ;;  %v1710_v19 = vrot.slane %v1706_v44, 4 }
 0x292   : > { %1772 = vst [vmem:[#allocation3 + $0x28] sm:$0xf] %v1771_v30  ;;  %1775 = vst [vmem:[#allocation3 + $0x2c] sm:$0x1] %v1774_v31  ;;  %v1789_v18 = vsel %vm4406_vm6, %v1725_v52, %v1788_v34  ;;  %v1792_v9 = vsel %vm4227_vm10, %v1726_v10, %v1791_v29  ;;  %v3049_v47 = vcombine.low %v4426_v42, %v4491_v16  ;;  %v2190_v32 = vrot.slane %v3035_v4, 1 }
 0x293   : > { %1790 = vst [vmem:[#allocation3 + $0x40] sm:$0xf] %v1789_v18  ;;  %1793 = vst [vmem:[#allocation3 + $0x44] sm:$0x1] %v1792_v9  ;;  %v1777_v15 = vsel %vm4406_vm6, %v1709_v48, %v1776_v60  ;;  %v1780_v6 = vsel %vm4227_vm10, %v1710_v19, %v1779_v21  ;;  %2053 = vrot.lane.b32.xlu1 %v3017_v13, %s3482_s9  ;;  %v3033_v33 = vcombine.low %v1835_v58, %v1827_v62  ;;  %v1804_v20 = vld [vmem:[#allocation3 + $0x14] sm:$0x1] }
 0x294   : > { %1778 = vst [vmem:[#allocation3 + $0x30] sm:$0xf] %v1777_v15  ;;  %1781 = vst [vmem:[#allocation3 + $0x34] sm:$0x1] %v1780_v6  ;;  %2195 = vrot.lane.b32.xlu0 %v2187_v0, %s3483_s8  ;;  %v3026_v63 = vcombine.low %v4428_v55, %v4439_v14  ;;  %v3040_v2 = vcombine.low %v4494_v61, %v4494_v61  ;;  %v3012_v46 = vcombine.low %v1814_v45, %v1806_v8  ;;  %v4524_v18 = vld [vmem:[#allocation3 + $0x10] sm:$0xf] }
 0x295   : > { %v2285_v39 = vshll.u32 %v3049_v47, 16  ;;  %v1933_v42 = vrot.slane %v1931_v22, 1  ;;  %v3001_v49 = vcombine.low %v4499_v59, %v4451_v41  ;;  %v2188_v11 = vrot.slane %v3033_v33, 1 }
 0x296   : > { %v1929_v34 = vshrl.u32 %v3003_v26, 16  ;;  %v2108_v29 = vshll.u32 %v3026_v63, 16  ;;  %v3024_v55 = vcombine.low %v4437_v24, %v1826_v37  ;;  %v2007_v14 = vrot.slane %v3012_v46, 1 }
 0x297   : > { %2201 = vrot.lane.b32.xlu1 %v2190_v32, %s3483_s8  ;;  %v3010_v7 = vcombine.low %v1812_v56, %v1804_v20  ;;  %v2287_v35 = vrot.slane %v2285_v39, 1  ;;  %v1917_v28 = vshll.u32 %v3001_v49, 16  ;;  %v2283_v23 = vshrl.u32 %v3049_v47, 16 }
 0x298   : > { %2235 = vrot.lane.b32.xlu0 %v3040_v2, %s3479_s20  ;;  %v1934_v50 = vor.u32 %v1933_v42, %v1929_v34  ;;  %v2110_v41 = vrot.slane %v2108_v29, 1  ;;  %v2094_v60 = vshll.u32 %v3024_v55, 16  ;;  %v3004_v38 = vcombine.low %v4511_v25, %v1806_v8  ;;  %v4521_v19 = vld [vmem:[#allocation3 + $0x38] sm:$0xf]  ;;  %v1809_v33 = vld [vmem:[#allocation3 + $0x3c] sm:$0x1] }
 0x299   : > { %v2005_v43 = vrot.slane %v3010_v7, 1  ;;  %v2106_v24 = vshrl.u32 %v3026_v63, 16  ;;  %v1919_v44 = vrot.slane %v1917_v28, 1  ;;  %v3027_v51 = vcombine.low %v4447_v53, %v1829_v54  ;;  %v4533_v13 = vld [vmem:[#allocation3 + $0x38] sm:$0xf] }
 0x29a   : > { %v2288_v21 = vor.u32 %v2287_v35, %v2283_v23  ;;  %v1915_v1 = vshrl.u32 %v3001_v49, 16  ;;  %v2096_v12 = vrot.slane %v2094_v60, 1  ;;  %v1938_v52 = vshll.u32 %v3004_v38, 16  ;;  %v4541_v47 = vld [vmem:[#allocation3 + $0x28] sm:$0xf] }
 0x29b   : > { %2197 = vrot.lane.b32.xlu1 %v2188_v11, %s3483_s8  ;;  %v2111_v10 = vor.u32 %v2110_v41, %v2106_v24  ;;  %v2092_v37 = vshrl.u32 %v3024_v55, 16  ;;  %v3025_v30 = vcombine.low %v4477_v40, %v1827_v62  ;;  %v2115_v31 = vshll.u32 %v3027_v51, 16  ;;  %v4544_v32 = vld [vmem:[#allocation3 + $0x28] sm:$0xf]  ;;  %v1817_v63 = vld [vmem:[#allocation3 + $0x38] sm:$0xe] }
 0x29c   : > { %2019 = vrot.lane.b32.xlu0 %v2007_v14, %s3477_s29  ;;  %v1920_v48 = vor.u32 %v1919_v44, %v1915_v1  ;;  %v1940_v53 = vrot.slane %v1938_v52, 1  ;;  %v1936_v6 = vshrl.u32 %v3004_v38, 16  ;;  %v3045_v40 = vcombine.low %v4521_v19, %v4521_v19  ;;  %v1832_v11 = vld [vmem:[#allocation3 + $0x3c] sm:$0x1]  ;;  %v1840_v34 = vld [vmem:[#allocation3 + $0x38] sm:$0xe] }
 0x29d   : > { %v2097_v5 = vor.u32 %v2096_v12, %v2092_v37  ;;  %v2101_v9 = vshll.u32 %v3025_v30, 16  ;;  %v2117_v15 = vrot.slane %v2115_v31, 1  ;;  %v2113_v54 = vshrl.u32 %v3027_v51, 16  ;;  %v4554_v14 = vld [vmem:[#allocation3 + $0x40] sm:$0xf] }
 0x29e   : > { %v3002_v17 = vcombine.low %v4524_v18, %v1804_v20  ;;  %v1941_v26 = vor.u32 %v1940_v53, %v1936_v6  ;;  %v2099_v4 = vshrl.u32 %v3025_v30, 16  ;;  %v3048_v58 = vcombine.low %v4494_v61, %v4531_v36  ;;  %v1856_v7 = vld [vmem:[#allocation3 + $0x3c] sm:$0x1]  ;;  %v1864_v35 = vld [vmem:[#allocation3 + $0x38] sm:$0xe] }
 0x29f   : > { %1969 = vrot.lane.b32.xlu1 %v1934_v50, %s3472_s12  ;;  %v2103_v0 = vrot.slane %v2101_v9, 1  ;;  %v2118_v62 = vor.u32 %v2117_v15, %v2113_v54  ;;  %v3022_v8 = vcombine.low %v4533_v13, %v4533_v13  ;;  %v3020_v61 = vcombine.low %v4541_v47, %v4541_v47  ;;  %v1807_v60 = vld [vmem:[#allocation3 + $0x2c] sm:$0x1]  ;;  %v1815_v38 = vld [vmem:[#allocation3 + $0x28] sm:$0xe] }
 0x2a0   : > { %2015 = vrot.lane.b32.xlu0 %v2005_v43, %s3477_s29  ;;  %v1924_v45 = vshll.u32 %v3002_v17, 16  ;;  %v2278_v2 = vshll.u32 %v3048_v58, 16  ;;  %v3043_v20 = vcombine.low %v4544_v32, %v4544_v32  ;;  %v1922_v56 = vshrl.u32 %v3002_v17, 16  ;;  %v1849_v24 = vld [vmem:[#allocation3 + $0x40] sm:$0xf] }
 0x2a1   : > { %v2104_v22 = vor.u32 %v2103_v0, %v2099_v4  ;;  %v3015_v39 = vcombine.low %v1817_v63, %v1809_v33  ;;  %v2276_v29 = vshrl.u32 %v3048_v58, 16  ;;  %v3038_v50 = vcombine.low %v1840_v34, %v1832_v11  ;;  %v1830_v44 = vld [vmem:[#allocation3 + $0x2c] sm:$0x1]  ;;  %v1838_v51 = vld [vmem:[#allocation3 + $0x28] sm:$0xe] }
 0x2a2   : > { %v1926_v46 = vrot.slane %v1924_v45, 1  ;;  %v2280_v42 = vrot.slane %v2278_v2, 1  ;;  %v3023_v23 = vcombine.low %v4554_v14, %v4554_v14  ;;  %v3061_v41 = vcombine.low %v1864_v35, %v1856_v7  ;;  %v1823_v30 = vld [vmem:[#allocation3 + $0x30] sm:$0xf]  ;;  %v1833_v31 = vld [vmem:[#allocation3 + $0x44] sm:$0x1] }
 0x2a3   : > { %2333 = vrot.lane.b32.xlu1 %v2288_v21, %s3480_s22  ;;  %v2010_v55 = vrot.slane %v3015_v39, 1  ;;  %v2193_v43 = vrot.slane %v3038_v50, 1  ;;  %v3013_v1 = vcombine.low %v1815_v38, %v1807_v60  ;;  %v3046_v12 = vcombine.low %v1849_v24, %v1849_v24  ;;  %v1857_v9 = vld [vmem:[#allocation3 + $0x44] sm:$0x1]  ;;  %v1865_v15 = vld [vmem:[#allocation3 + $0x40] sm:$0xe] }
 0x2a4   : > { %2151 = vrot.lane.b32.xlu0 %v2111_v10, %s3484_s11  ;;  %v1927_v49 = vor.u32 %v1926_v46, %v1922_v56  ;;  %v2281_v28 = vor.u32 %v2280_v42, %v2276_v29  ;;  %v2376_v21 = vrot.slane %v3061_v41, 1  ;;  %v3036_v52 = vcombine.low %v1838_v51, %v1830_v44  ;;  %v4563_v10 = vld [vmem:[#allocation3 + $0x38] sm:$0xf]  ;;  %v1831_v17 = vld [vmem:[#allocation3 + $0x34] sm:$0x1] }
 0x2a5   : > { %v2008_v37 = vrot.slane %v3013_v1, 1  ;;  %v3007_v6 = vcombine.low %v4563_v10, %v1809_v33  ;;  %v1808_v4 = vld [vmem:[#allocation3 + $0x34] sm:$0x1]  ;;  %v1816_v58 = vld [vmem:[#allocation3 + $0x30] sm:$0xe]  ;;  %v3030_v2 = vcombine.low %v4533_v13, %v1832_v11  ;;  %v3028_v34 = vcombine.low %v4541_v47, %v1830_v44 }
 0x2a6   : > { %v2191_v53 = vrot.slane %v3036_v52, 1  ;;  %v4576_v63 = vld [vmem:[#allocation3 + $0x28] sm:$0xf]  ;;  %v3014_v46 = vcombine.low %v1816_v58, %v1808_v4  ;;  %v1863_v56 = vld [vmem:[#allocation3 + $0x30] sm:$0xe]  ;;  %v3054_v41 = vcombine.low %v1849_v24, %v1857_v9  ;;  %v3363_v52 = vld [vmem:[%s4825_s3 + $0x8] sm:$0xff]  }
 0x2a7   : > { %1965 = vrot.lane.b32.xlu1 %v1920_v48, %s3472_s12  ;;  %v1841_v48 = vld [vmem:[#allocation3 + $0x40] sm:$0xe]  ;;  %v1959_v33 = vshll.u32 %v3007_v6, 16  ;;  %v3005_v39 = vcombine.low %v4576_v63, %v1807_v60  ;;  %v1957_v11 = vshrl.u32 %v3007_v6, 16  ;;  %v4592_v47 = vld [vmem:[#allocation3 + $0x30] sm:$0xf] }
 0x2a8   : > { %2147 = vrot.lane.b32.xlu0 %v2097_v5, %s3484_s11  ;;  %v4567_v5 = vld [vmem:[#allocation3 + $0x30] sm:$0xf]  ;;  %v3039_v54 = vcombine.low %v1841_v48, %v1833_v31  ;;  %v2009_v29 = vrot.slane %v3014_v46, 1  ;;  %v2122_v44 = vshll.u32 %v3028_v34, 16  ;;  %v4595_v51 = vld [vmem:[#allocation3 + $0x2c] sm:$0x1] }
 0x2a9   : > { %v3044_v0 = vcombine.low %v4567_v5, %v4567_v5  ;;  %v1961_v42 = vrot.slane %v1959_v33, 1  ;;  %v1945_v50 = vshll.u32 %v3005_v39, 16  ;;  %v2120_v6 = vshrl.u32 %v3028_v34, 16 }
 0x2aa   : > { %v2194_v45 = vrot.slane %v3039_v54, 1  ;;  %v2124_v48 = vrot.slane %v2122_v44, 1  ;;  %vm2501_vm10 = vcmask 457728  }
 0x2ab   : > { %2245 = vrot.lane.b32.xlu1 %v3045_v40, %s3479_s20  ;;  %v3021_v40 = vcombine.low %v1823_v30, %v1823_v30  ;;  %v1962_v35 = vor.u32 %v1961_v42, %v1957_v11  ;;  %v3366_v42 = vld [vmem:[%s4825_s3 + $0x20] ss:$0 sps:$4 sm:$0xff]  }
 0x2ac   : > { %1971 = vrot.lane.b32.xlu0 %v1941_v26, %s3472_s12  ;;  %v1839_v26 = vld [vmem:[#allocation3 + $0x30] sm:$0xe] }
 0x2af   : > { %2153 = vrot.lane.b32.xlu1 %v2118_v62, %s3484_s11  ;;  %v3062_v62 = vcombine.low %v1865_v15, %v1857_v9  ;;  %v2320_v9 = vshll.u32 %v3054_v41, 16  ;;  %v3051_v15 = vcombine.low %v4544_v32, %v4595_v51  ;;  %v3364_v32 = vld [vmem:[%s4825_s3 + $0x10] sm:$0xff]  }
 0x2b0   : > { %2063 = vrot.lane.b32.xlu0 %v3022_v8, %s3482_s9  ;;  %v3053_v8 = vcombine.low %v4521_v19, %v1856_v7  ;;  %v3031_v7 = vcombine.low %v4554_v14, %v1833_v31  ;;  %v3029_v14 = vcombine.low %v1823_v30, %v1831_v17  ;;  %v4602_v31 = vld [vmem:[#allocation3 + $0x24] sm:$0x1] }
 0x2b2   : > { %v2143_v24 = vshll.u32 %v3031_v7, 16 }
 0x2b3   : > { %2149 = vrot.lane.b32.xlu1 %v2104_v22, %s3484_s11  ;;  %v3037_v22 = vcombine.low %v1839_v26, %v1831_v17  ;;  %v2129_v17 = vshll.u32 %v3029_v14, 16  ;;  %v3050_v26 = vcombine.low %v4458_v3, %v4602_v31 }
 0x2b4   : > { %2059 = vrot.lane.b32.xlu0 %v3020_v61, %s3482_s9  ;;  %v2377_v61 = vrot.slane %v3062_v62, 1  ;;  %v2145_v54 = vrot.slane %v2143_v24, 1  ;;  %v2322_v62 = vrot.slane %v2320_v9, 1 }
 0x2b5   : > { %v2192_v19 = vrot.slane %v3037_v22, 1  ;;  %v2318_v22 = vshrl.u32 %v3054_v41, 16  ;;  %v2131_v33 = vrot.slane %v2129_v17, 1 }
 0x2b7   : > { %2241 = vrot.lane.b32.xlu1 %v3043_v20, %s3479_s20  ;;  %v4580_v20 = vld [vmem:[#allocation3 + $0x34] sm:$0x1] }
 0x2b8   : > { %1967 = vrot.lane.b32.xlu0 %v1927_v49, %s3472_s12  ;;  %v2313_v49 = vshll.u32 %v3053_v8, 16  ;;  %v3060_v13 = vcombine.low %v1863_v56, %v4580_v20  ;;  %v3052_v46 = vcombine.low %v4567_v5, %v4580_v20  ;;  %v2323_v56 = vor.u32 %v2322_v62, %v2318_v22  ;;  %v1860_v20 = vld [vmem:[#allocation3 + $0x18] sm:$0xe] }
 0x2b9   : > { %v3057_v41 = vcombine.low %v1860_v20, %v4491_v16 }
 0x2ba   : > { %v2375_v60 = vrot.slane %v3060_v13, 1  ;;  %v2304_v16 = vshrl.u32 %v3052_v46, 16 }
 0x2bb   : > { %2025 = vrot.lane.b32.xlu1 %v2010_v55, %s3477_s29  ;;  %v2136_v55 = vshll.u32 %v3030_v2, 16 }
 0x2bc   : > { %2331 = vrot.lane.b32.xlu0 %v2281_v28, %s3480_s22  ;;  %v2315_v28 = vrot.slane %v2313_v49, 1 }
 0x2bd   : > { %v2138_v38 = vrot.slane %v2136_v55, 1  ;;  %v2297_v55 = vshrl.u32 %v3051_v15, 16 }
 0x2bf   : > { %2065 = vrot.lane.b32.xlu1 %v3023_v23, %s3482_s9  ;;  %v3362_v23 = vld [vmem:[%s4825_s3] sm:$0xff]  }
 0x2c0   : > { %2207 = vrot.lane.b32.xlu0 %v2193_v43, %s3483_s8  ;;  %v2311_v43 = vshrl.u32 %v3053_v8, 16  ;;  %3163 = vmatprep.subr.bf16.mxu1 %v3362_v23  ;;  %v4611_v8 = vpop.permute.xlu1 %2249 }
 0x2c1   : > { %3168 = vmatpush3.bf16.msra.mxu1 %v3362_v23  ;;  %3135 = vmatprep.subr.bf16.mxu0 %v3362_v23 }
 0x2c2   : > { %v2316_v1 = vor.u32 %v2315_v28, %v2311_v43  ;;  %3136 = vmatpush3.bf16.msra.mxu0 %v3362_v23  ;;  %3164 = vmatprep.subr.bf16.mxu1 %v3363_v52  ;;  %v2613_v28 = vsel %vm2611_vm3, %v3366_v42, 0 }
 0x2c3   : > { %2389 = vrot.lane.b32.xlu1 %v2376_v21, %s3481_s23  ;;  %v2134_v21 = vshrl.u32 %v3030_v2, 16  ;;  %3137 = vmatprep.subr.bf16.mxu0 %v3363_v52  ;;  %v2299_v2 = vshll.u32 %v3051_v15, 16 }
 0x2c4   : > { %2247 = vrot.lane.b32.xlu0 %v3046_v12, %s3479_s20  ;;  %v1947_v12 = vrot.slane %v1945_v50, 1  ;;  %v4627_v5 = vpop.permute.xlu1 %2345  ;;  %v2290_v50 = vshrl.u32 %v3050_v26, 16 }
 0x2c5   : > { %v2139_v30 = vor.u32 %v2138_v38, %v2134_v21  ;;  %3169 = vmatpush3.bf16.msra.mxu1 %v3363_v52  ;;  %v1862_v38 = vld [vmem:[#allocation3 + $0x28] sm:$0xe]  ;;  %v1859_v21 = vld [vmem:[#allocation3 + $0x10] sm:$0xe] }
 0x2c6   : > { %3138 = vmatpush3.bf16.msra.mxu0 %v3363_v52  ;;  %3165 = vmatprep.subr.bf16.mxu1 %v3364_v32 }
 0x2c7   : > { %2021 = vrot.lane.b32.xlu1 %v2008_v37, %s3477_s29  ;;  %v3006_v37 = vcombine.low %v4592_v47, %v1808_v4  ;;  %v2141_v4 = vshrl.u32 %v3031_v7, 16  ;;  %3139 = vmatprep.subr.bf16.mxu0 %v3364_v32  ;;  %v2306_v7 = vshll.u32 %v3052_v46, 16 }
 0x2c8   : > { %2203 = vrot.lane.b32.xlu0 %v2191_v53, %s3483_s8  ;;  %v1943_v53 = vshrl.u32 %v3005_v39, 16 }
 0x2c9   : > { %v1952_v58 = vshll.u32 %v3006_v37, 16  ;;  %v2146_v3 = vor.u32 %v2145_v54, %v2141_v4  ;;  %3170 = vmatpush3.bf16.msra.mxu1 %v3364_v32  ;;  %v1950_v49 = vshrl.u32 %v3006_v37, 16  ;;  %v2308_v44 = vrot.slane %v2306_v7, 1 }
 0x2ca   : > { %3140 = vmatpush3.bf16.msra.mxu0 %v3364_v32  ;;  %v3056_v37 = vcombine.low %v1859_v21, %v4531_v36 }
 0x2cb   : > { %2061 = vrot.lane.b32.xlu1 %v3021_v40, %s3482_s9  ;;  %v1948_v40 = vor.u32 %v1947_v12, %v1943_v53  ;;  %v1954_v39 = vrot.slane %v1952_v58, 1  ;;  %v3059_v12 = vcombine.low %v1862_v38, %v4595_v51  ;;  %v2309_v52 = vor.u32 %v2308_v44, %v2304_v16 }
 0x2cc   : > { %2243 = vrot.lane.b32.xlu0 %v3044_v0, %s3479_s20  ;;  %v2125_v0 = vor.u32 %v2124_v48, %v2120_v6  ;;  %v2371_v6 = vrot.slane %v3056_v37, 1 }
 0x2cd   : > { %v1955_v11 = vor.u32 %v1954_v39, %v1950_v49  ;;  %v2374_v48 = vrot.slane %v3059_v12, 1 }
 0x2cf   : > { %2209 = vrot.lane.b32.xlu1 %v2194_v45, %s3483_s8  ;;  %v3365_v45 = vld [vmem:[%s4825_s3 + $0x18] sm:$0xff]  }
 0x2d0   : > { %2391 = vrot.lane.b32.xlu0 %v2377_v61, %s3481_s23  ;;  %v2292_v61 = vshll.u32 %v3050_v26, 16  ;;  %3166 = vmatprep.subr.bf16.mxu1 %v3365_v45 }
 0x2d1   : > { %3141 = vmatprep.subr.bf16.mxu0 %v3365_v45  ;;  %3171 = vmatpush3.bf16.msra.mxu1 %v3365_v45 }
 0x2d2   : > { %v2294_v13 = vrot.slane %v2292_v61, 1  ;;  %3199 = vmatprep.subr.msk.bf16.mxu1 %vm2611_vm3, %v3366_v42  ;;  %3142 = vmatpush3.bf16.msra.mxu0 %v3365_v45 }
 0x2d3   : > { %2205 = vrot.lane.b32.xlu1 %v2192_v19, %s3483_s8  ;;  %v2127_v19 = vshrl.u32 %v3029_v14, 16  ;;  %3198 = vmatprep.subr.msk.bf16.mxu0 %vm2611_vm3, %v3366_v42  ;;  %v4641_v14 = vpop.permute.xlu1 %2393 }
 0x2d4   : > { %2023 = vrot.lane.b32.xlu0 %v2009_v29, %s3477_s29  ;;  %v2301_v29 = vrot.slane %v2299_v2, 1  ;;  %v2295_v43 = vor.u32 %v2294_v13, %v2290_v50  ;;  %s2840_s29 = scalar_lea.sflag [#allocation6], %s3630_s16 }
 0x2d5   : > { %v2132_v34 = vor.u32 %v2131_v33, %v2127_v19  ;;  %3172 = vmatpush3.bf16.msra.mxu1 %v2613_v28 }
 0x2d6   : > { %v2302_v23 = vor.u32 %v2301_v29, %v2297_v55  ;;  %3144 = vmatpush3.bf16.msra.mxu0 %v2613_v28 }
 0x2d7   : > { %1977 = vrot.lane.b32.xlu1 %v1962_v35, %s3472_s12  ;;  %v1964_v35 = vpop.permute.xlu0 %1963 }
 0x2d8   : > { %2387 = vrot.lane.b32.xlu0 %v2375_v60, %s3481_s23  ;;  %v4637_v60 = vld [vmem:[%s4827_s5] sm:$0x3]  ;;  %v2397_v15 = vsel %vm1399_vm12, %v4367_v57, %v1964_v35 }
 0x2d9   : > { %3200 = vmatprep.subr.msk.bf16.mxu1 %vm1554_vm7, %v4637_v60 }
 0x2db   : > { %2341 = vrot.lane.b32.xlu1 %v2316_v1, %s3480_s22  ;;  %v2372_v1 = vrot.slane %v3057_v41, 1  ;;  %v2012_v24 = vpop.permute.xlu0 %2011 }
 0x2dc   : > { %2159 = vrot.lane.b32.xlu0 %v2139_v30, %s3484_s11  ;;  %v1861_v30 = vld [vmem:[#allocation3 + $0x20] sm:$0xe] }
 0x2dd   : > { %v3058_v51 = vcombine.low %v1861_v30, %v4602_v31 }
 0x2df   : > { %1973 = vrot.lane.b32.xlu1 %v1948_v40, %s3472_s12  ;;  %v2420_v40 = vsel %vm1425_vm14, %v2397_v15, %v2012_v24  ;;  %v2373_v17 = vrot.slane %v3058_v51, 1 }
 0x2e0   : > { %2155 = vrot.lane.b32.xlu0 %v2125_v0, %s3484_s11 }
 0x2e3   : > { %2161 = vrot.lane.b32.xlu1 %v2146_v3, %s3484_s11 }
 0x2e4   : > { %2343 = vrot.lane.b32.xlu0 %v2323_v56, %s3480_s22 }
 0x2e7   : > { %2157 = vrot.lane.b32.xlu1 %v2132_v34, %s3484_s11 }
 0x2e8   : > { %1975 = vrot.lane.b32.xlu0 %v1955_v11, %s3472_s12  ;;  %s3405_s12 = sshll.u32 %s3485_s28, 4  ;;  %s3406_s12 = int_to_ptr.vmem [resolvable:$false] %s3405_s12 }
 0x2eb   : > { %2337 = vrot.lane.b32.xlu1 %v2302_v23, %s3480_s22 }
 0x2ec   : > { %2335 = vrot.lane.b32.xlu0 %v2295_v43, %s3480_s22 }
 0x2ef   : > { %2381 = vrot.lane.b32.xlu1 %v2372_v1, %s3481_s23 }
 0x2f0   : > { %2339 = vrot.lane.b32.xlu0 %v2309_v52, %s3480_s22  ;;  %s3407_s22 = scalar_lea.vmem %s3406_s12, 128 }
 0x2f3   : > { %2385 = vrot.lane.b32.xlu1 %v2374_v48, %s3481_s23 }
 0x2f4   : > { %2379 = vrot.lane.b32.xlu0 %v2371_v6, %s3481_s23 }
 0x2f5   : > { %v2238_v53 = vpop.permute.xlu1 %2237 }
 0x2f6   : > { %v2056_v9 = vpop.permute.xlu0 %2055 }
 0x2f8   : > { %2383 = vrot.lane.b32.xlu0 %v2373_v17, %s3481_s23 }
 0x2f9   : > { %v2018_v54 = vpop.permute.xlu1 %2017 }
 0x2fa   : > { %v2052_v36 = vpop.permute.xlu0 %2051 }
 0x2fb   : > { %v2436_v26 = vsel %vm1451_vm1, %v2420_v40, %v2052_v36 }
 0x2fd   : > { %v2058_v0 = vpop.permute.xlu1 %2057 }
 0x2fe   : > { %v2200_v62 = vpop.permute.xlu0 %2199 }
 0x301   : > { %v2014_v4 = vpop.permute.xlu1 %2013 }
 0x302   : > { %v2240_v57 = vpop.permute.xlu0 %2239 }
 0x305   : > { %v2054_v58 = vpop.permute.xlu1 %2053 }
 0x306   : > { %v2196_v32 = vpop.permute.xlu0 %2195 }
 0x309   : > { %v2202_v45 = vpop.permute.xlu1 %2201 }
 0x30a   : > { %v2236_v22 = vpop.permute.xlu0 %2235 }
 0x30d   : > { %v2198_v31 = vpop.permute.xlu1 %2197 }
 0x30e   : > { %v4658_v3 = vpop.permute.xlu0 %2019 }
 0x311   : > { %v1970_v33 = vpop.permute.xlu1 %1969 }
 0x312   : > { %v2406_v2 = vsel %vm1399_vm12, %v4471_v27, %v1970_v33  ;;  %v2016_v46 = vpop.permute.xlu0 %2015 }
 0x313   : > { %v2426_v61 = vsel %vm1425_vm14, %v2406_v2, %v2018_v54 }
 0x314   : > { %v2442_v56 = vsel %vm1451_vm1, %v2426_v61, %v2058_v0 }
 0x315   : > { %v2334_v39 = vpop.permute.xlu1 %2333 }
 0x316   : > { %v2152_v19 = vpop.permute.xlu0 %2151 }
 0x319   : > { %v1966_v42 = vpop.permute.xlu1 %1965 }
 0x31a   : > { %v2400_v49 = vsel %vm1399_vm12, %v4499_v59, %v1966_v42  ;;  %v2148_v29 = vpop.permute.xlu0 %2147 }
 0x31b   : > { %v2422_v34 = vsel %vm1425_vm14, %v2400_v49, %v2014_v4  ;;  %v2452_v20 = vsel %vm1485_vm4, %v2436_v26, %v2148_v29 }
 0x31c   : > { %v2438_v27 = vsel %vm1451_vm1, %v2422_v34, %v2054_v58  ;;  %v2469_v13 = vsel %vm2467_vm8, %v2452_v20, %v2196_v32 }
 0x31d   : > { %v4670_v11 = vpop.permute.xlu1 %2245  ;;  %v4673_v55 = vsel %vm2484_vm9, %v2469_v13, %v2236_v22 }
 0x31e   : > { %v1972_v7 = vpop.permute.xlu0 %1971 }
 0x321   : > { %v2154_v35 = vpop.permute.xlu1 %2153 }
 0x322   : > { %v2458_v59 = vsel %vm1485_vm4, %v2442_v56, %v2154_v35  ;;  %v2064_v28 = vpop.permute.xlu0 %2063 }
 0x323   : > { %v4677_v50 = vsel %vm2467_vm8, %v2458_v59, %v2202_v45 }
 0x325   : > { %v2150_v23 = vpop.permute.xlu1 %2149 }
 0x326   : > { %v2454_v41 = vsel %vm1485_vm4, %v2438_v27, %v2150_v23  ;;  %v2060_v43 = vpop.permute.xlu0 %2059 }
 0x327   : > { %v2471_v38 = vsel %vm2467_vm8, %v2454_v41, %v2198_v31 }
 0x328   : > { %v2488_v44 = vsel %vm2484_vm9, %v2471_v38, %v2238_v53 }
 0x329   : > { %v4682_v21 = vpop.permute.xlu1 %2241  ;;  %v4685_v16 = vsel %vm2501_vm10, %v2488_v44, %v2334_v39 }
 0x32a   : > { %v1968_v1 = vpop.permute.xlu0 %1967 }
 0x32b   : > { %v2403_v12 = vsel %vm1399_vm12, %v4524_v18, %v1968_v1 }
 0x32c   : > { %v2424_v24 = vsel %vm1425_vm14, %v2403_v12, %v2016_v46 }
 0x32d   : > { %v2026_v52 = vpop.permute.xlu1 %2025  ;;  %v2440_v37 = vsel %vm1451_vm1, %v2424_v24, %v2056_v9 }
 0x32e   : > { %v4691_v30 = vpop.permute.xlu0 %2331  ;;  %v2456_v48 = vsel %vm1485_vm4, %v2440_v37, %v2152_v19  ;;  %v2409_v19 = vsel %vm1399_vm12, %v4511_v25, %v1972_v7 }
 0x32f   : > { %v2473_v53 = vsel %vm2467_vm8, %v2456_v48, %v2200_v62 }
 0x330   : > { %v4696_v6 = vsel %vm2484_vm9, %v2473_v53, %v2240_v57 }
 0x331   : > { %v2066_v15 = vpop.permute.xlu1 %2065 }
 0x332   : > { %v2208_v51 = vpop.permute.xlu0 %2207 }
 0x335   : > { %v2390_v40 = vpop.permute.xlu1 %2389 }
 0x336   : > { %v2248_v54 = vpop.permute.xlu0 %2247 }
 0x339   : > { %v2022_v36 = vpop.permute.xlu1 %2021 }
 0x33a   : > { %v2204_v18 = vpop.permute.xlu0 %2203 }
 0x33d   : > { %v2062_v17 = vpop.permute.xlu1 %2061 }
 0x33e   : > { %v2244_v26 = vpop.permute.xlu0 %2243 }
 0x341   : > { %v2210_v0 = vpop.permute.xlu1 %2209 }
 0x342   : > { %v2392_v4 = vpop.permute.xlu0 %2391 }
 0x345   : > { %v2206_v9 = vpop.permute.xlu1 %2205 }
 0x346   : > { %v2024_v58 = vpop.permute.xlu0 %2023 }
 0x349   : > { %v1978_v32 = vpop.permute.xlu1 %1977 }
 0x34a   : > { %v2388_v45 = vpop.permute.xlu0 %2387  ;;  %v2418_v57 = vsel %vm1399_vm12, %v4563_v10, %v1978_v32 }
 0x34b   : > { %v2434_v46 = vsel %vm1425_vm14, %v2418_v57, %v2026_v52 }
 0x34c   : > { %v2450_v42 = vsel %vm1451_vm1, %v2434_v46, %v2066_v15  ;;  %v3078_v46 = vld [vmem:[%s4828_s6] ss:$0 sm:$0xff] }
 0x34d   : > { %v2342_v22 = vpop.permute.xlu1 %2341 }
 0x34e   : > { %v2160_v31 = vpop.permute.xlu0 %2159 }
 0x351   : > { %v1974_v62 = vpop.permute.xlu1 %1973 }
 0x352   : > { %v2412_v33 = vsel %vm1399_vm12, %v4576_v63, %v1974_v62  ;;  %v2156_v2 = vpop.permute.xlu0 %2155  ;;  %v2428_v63 = vsel %vm1425_vm14, %v2409_v19, %v4658_v3 }
 0x353   : > { %v2430_v56 = vsel %vm1425_vm14, %v2412_v33, %v2022_v36  ;;  %v2444_v27 = vsel %vm1451_vm1, %v2428_v63, %v2060_v43 }
 0x354   : > { %v2446_v49 = vsel %vm1451_vm1, %v2430_v56, %v2062_v17  ;;  %v2460_v7 = vsel %vm1485_vm4, %v2444_v27, %v2156_v2 }
 0x355   : > { %v2162_v61 = vpop.permute.xlu1 %2161  ;;  %v2477_v44 = vsel %vm2467_vm8, %v2460_v7, %v2204_v18  ;;  %v3367_v18 = vld [vmem:[%s3634_s15] ss:$8 sps:$4 sm:$0xff]  }
 0x356   : > { %v2344_v39 = vpop.permute.xlu0 %2343  ;;  %v2466_v10 = vsel %vm1485_vm4, %v2450_v42, %v2162_v61  ;;  %v2494_v37 = vsel %vm2484_vm9, %v2477_v44, %v2244_v26 }
 0x357   : > { %v2483_v35 = vsel %vm2467_vm8, %v2466_v10, %v2210_v0  ;;  %v2721_v0 = vsel %vm1554_vm7, %v4637_v60, 0  ;;  %vm2837_vm7 = vcmask 519168  }
 0x359   : > { %v2158_v34 = vpop.permute.xlu1 %2157 }
 0x35a   : > { %v2462_v29 = vsel %vm1485_vm4, %v2446_v49, %v2158_v34  ;;  %v1976_v20 = vpop.permute.xlu0 %1975 }
 0x35b   : > { %v2479_v13 = vsel %vm2467_vm8, %v2462_v29, %v2206_v9  ;;  %v2415_v25 = vsel %vm1399_vm12, %v4592_v47, %v1976_v20  ;;  %v2500_v47 = vsel %vm2484_vm9, %v2483_v35, %v4611_v8  ;;  %vm2598_vm12 = vcmask 588800  }
 0x35c   : > { %v2432_v59 = vsel %vm1425_vm14, %v2415_v25, %v2024_v58  ;;  %v2496_v3 = vsel %vm2484_vm9, %v2479_v13, %v4670_v11  ;;  %v2517_v11 = vsel %vm2501_vm10, %v2500_v47, %v4627_v5  ;;  %v2503_v5 = vsel %vm2501_vm10, %v4673_v55, %v4691_v30 }
 0x35d   : > { %v2338_v23 = vpop.permute.xlu1 %2337  ;;  %v2448_v41 = vsel %vm1451_vm1, %v2432_v59, %v2064_v28  ;;  %v2513_v24 = vsel %vm2501_vm10, %v2496_v3, %v2342_v22  ;;  %v2534_v36 = vsel %vm2518_vm11, %v2517_v11, %v4641_v14  ;;  %v2492_v55 = vsel %vm2484_vm9, %v4677_v50, %v4682_v21  ;;  %v3368_v22 = vld [vmem:[%s3634_s15 + $0x10] ss:$8 sps:$4 sm:$0xff]   ;;  %v3064_v21 = vld [vmem:[%s4826_s4] ss:$0 sm:$0xff] }
 0x35e   : > { %v2464_v38 = vsel %vm1485_vm4, %v2448_v41, %v2160_v31  ;;  %v2336_v43 = vpop.permute.xlu0 %2335  ;;  %v2509_v60 = vsel %vm2501_vm10, %v2492_v55, %v2338_v23  ;;  %v3369_v31 = vld [vmem:[%s3634_s15 + $0x20] ss:$8 sps:$4 sm:$0xff]   ;;  %v3370_v50 = vld [vmem:[%s3634_s15 + $0x30] ss:$8 sps:$4 sm:$0xff]   ;;  %v3187_v44 = vadd.f32 %v3078_v46, %v3064_v21  ;;  %s2931_s15 = sshll.u32 %s3630_s16, 2 }
 0x35f   : > { %v2481_v1 = vsel %vm2467_vm8, %v2464_v38, %v2208_v51  ;;  %v2530_v51 = vsel %vm2518_vm11, %v2513_v24, %v2390_v40  ;;  %s296_s21 = scalar_lea.vmem [#allocation7], %s2931_s15 }
 0x360   : > { %v2498_v12 = vsel %vm2484_vm9, %v2481_v1, %v2248_v54  ;;  %s2853_s9 = sshll.u32 %s296_s21, 4  ;;  %s4780_s9 = int_to_ptr.vmem [resolvable:$true] %s2853_s9 }
 0x361   : > { %v2515_v28 = vsel %vm2501_vm10, %v2498_v12, %v2344_v39  ;;  %v2382_v52 = vpop.permute.xlu1 %2381  ;;  %s3401_s20 = scalar_lea.vmem %s4780_s9, 64  ;;  %p3408_p8 = scmp.lt.s32.totalorder %s4780_s9, %s3406_s12 }
 0x362   : > { %v2340_v48 = vpop.permute.xlu0 %2339  ;;  %v2532_v8 = vsel %vm2518_vm11, %v2515_v28, %v2392_v4  ;;  %v2522_v4 = vsel %vm2518_vm11, %v4685_v16, %v2382_v52  ;;  %v2507_v16 = vsel %vm2501_vm10, %v4696_v6, %v2336_v43  ;;  %p3402_p6 = scmp.ne.s32.totalorder %s4780_s9, %s3401_s20  ;;  %p3409_p10 = scmp.lt.s32.totalorder %s3407_s22, %s3401_s20 }
 0x363   : > { %v2511_v53 = vsel %vm2501_vm10, %v2494_v37, %v2340_v48  ;;  %v3068_v26 = vcombine.low %v2532_v8, %v2534_v36 }
 0x364   : > { %v2528_v15 = vsel %vm2518_vm11, %v2511_v53, %v2388_v45  ;;  %p3403_p12 = pnand %p3402_p6, %p4860_p11  ;;  %p3410_p0 = por %p3409_p10, %p3408_p8 }
 0x365   : > { %v3067_v54 = vcombine.low %v2528_v15, %v2530_v51  ;;  %v2386_v14 = vpop.permute.xlu1 %2385 }
 0x366   : > { %v2380_v17 = vpop.permute.xlu0 %2379  ;;  %v2526_v58 = vsel %vm2518_vm11, %v2509_v60, %v2386_v14  ;;  %p3404_p13 = pneg %p3403_p12 }
 0x367   : > { %v2520_v40 = vsel %vm2518_vm11, %v2503_v5, %v2380_v17  ;;  %3149 = vmatprep.mubr.msk.bf16.mxu1 %vm2598_vm12, %v3067_v54 }
 0x368   : > { %v3065_v9 = vcombine.low %v2520_v40, %v2522_v4  ;;  %3150 = vmatmul.mubr.msk.bf16.vlgmr.msra.gmra.mrb[0].mxu1 %vm2598_vm12, %v3068_v26  ;;  %p3411_p2 = pnand %p3410_p0, %p3404_p13 }
 0x369   : > { %3154 = vmatpush3.bf16.msra.mxu1 %v2721_v0  ;;  %3155 = vmatprep.mubr.msk.bf16.mxu1 %vm1374_vm0, %v3367_v18 }
 0x36a   : > { %3145 = vmatprep.mubr.msk.bf16.mxu0 %vm2598_vm12, %v3065_v9  ;;  %v2384_v30 = vpop.permute.xlu0 %2383 }
 0x36b   : > { %v2524_v32 = vsel %vm2518_vm11, %v2507_v16, %v2384_v30 }
 0x36c   : > { %v3066_v45 = vcombine.low %v2524_v32, %v2526_v58 }
 0x36e   : > { %3146 = vmatmul.mubr.msk.bf16.vlgmr.msra.gmra.mrb[8].mxu0 %vm2598_vm12, %v3066_v45 }
 0x370   : > { %3156 = vmatmul.mubr.msk.bf16.vlgmr.msra.gmra.mrb[4].mxu1 %vm1374_vm0, %v3368_v22 }
 0x371   : > { %3159 = vmatprep.mubr.msk.bf16.mxu1 %vm1374_vm0, %v3369_v31 }
 0x378   : > { %3160 = vmatmul.mubr.msk.bf16.gmra.mrb[0].mxu1 %vm1374_vm0, %v3370_v50 }
 0x441   : > { %v3147_v6 = vpop.f32.mrb[8].mxu0 }
 0x442   : > { %v2658_v62 = vadd.f32 %v3147_v6, %v3064_v21  ;;  %v2649_v57 = vpop.f32.mrb[9].mxu0 }
 0x443   : > { %v2650_v33 = vadd.f32 %v3064_v21, %v2649_v57  ;;  %v3148_v2 = vpop.f32.mrb[10].mxu0  ;;  %v3157_v61 = vpop.f32.mrb[4].mxu1 }
 0x444   : > { %v2661_v56 = vadd.f32 %v3148_v2, %v3064_v21  ;;  %v3174_v39 = vadd.f32 %v3157_v61, %v2658_v62  ;;  %v2652_v19 = vpop.f32.mrb[11].mxu0  ;;  %v2757_v42 = vpop.f32.mrb[5].mxu1 }
 0x445   : > { %v2653_v49 = vadd.f32 %v3064_v21, %v2652_v19  ;;  %v3177_v34 = vadd.f32 %v2757_v42, %v2650_v33  ;;  %v3158_v10 = vpop.f32.mrb[6].mxu1 }
 0x446   : > { %v3180_v29 = vadd.f32 %v3078_v46, %v2661_v56  ;;  %v2760_v63 = vpop.f32.mrb[7].mxu1  ;;  %v3175_v23 = vadd.f32 %v3174_v39, %v3078_v46 }
 0x447   : > { %v3178_v20 = vadd.f32 %v3177_v34, %v3078_v46  ;;  %v3183_v27 = vadd.f32 %v3078_v46, %v2653_v49 }
 0x448   : > { %v3181_v13 = vadd.f32 %v3180_v29, %v3158_v10  ;;  %v2798_v43 = vmax.f32 %v3175_v23, 0.0 }
 0x449   : > { %v2796_v25 = vmax.f32 %v3178_v20, 0.0  ;;  %v3184_v7 = vadd.f32 %v3183_v27, %v2760_v63 }
 0x44a   : > { %v2799_v47 = vmax.f32 %v3181_v13, 0.0 }
 0x44b   : > { %v3161_v35 = vpop.f32.mrb[0].mxu1  ;;  %2804 = vxpose.xlu0.b32.start [1/8] (short) (narrow) %v2796_v25, 8  ;;  %v2797_v41 = vmax.f32 %v3184_v7, 0.0 }
 0x44c   : > { %v2773_v59 = vpop.f32.mrb[1].mxu1  ;;  %v3186_v28 = vadd.f32 %v3187_v44, %v3161_v35 }
 0x44d   : > { %v3162_v3 = vpop.f32.mrb[2].mxu1  ;;  %v3188_v1 = vadd.f32 %v3187_v44, %v2773_v59 }
 0x44e   : > { %v2776_v38 = vpop.f32.mrb[3].mxu1  ;;  %v2802_v52 = vmax.f32 %v3186_v28, 0.0  ;;  %v3190_v37 = vadd.f32 %v3187_v44, %v3162_v3 }
 0x44f   : > { %2805 = vxpose.xlu0.b32.cont [2/8] (short) (narrow) %v2797_v41, 8  ;;  %v2800_v12 = vmax.f32 %v3188_v1, 0.0  ;;  %v3192_v24 = vadd.f32 %v3187_v44, %v2776_v38 }
 0x450   : > { %v2803_v48 = vmax.f32 %v3190_v37, 0.0 }
 0x451   : > { %v2801_v11 = vmax.f32 %v3192_v24, 0.0 }
 0x453   : > { %2806 = vxpose.xlu0.b32.cont [3/8] (short) (narrow) %v2798_v43, 8 }
 0x457   : > { %2807 = vxpose.xlu0.b32.cont [4/8] (short) (narrow) %v2799_v47, 8 }
 0x45b   : > { %2808 = vxpose.xlu0.b32.cont [5/8] (short) (narrow) %v2800_v12, 8 }
 0x45f   : > { %2809 = vxpose.xlu0.b32.cont [6/8] (short) (narrow) %v2801_v11, 8 }
 0x463   : > { %2810 = vxpose.xlu0.b32.cont [7/8] (short) (narrow) %v2802_v52, 8 }
 0x467   : > { %2811 = vxpose.xlu0.b32.end [8/8] (short) (narrow) %v2803_v48, 8 }
 0x4cb   : > { %v2820_v53 = vpop.trf.xlu0 }
 0x4cc   : > { %v2836_v8 = vpack.c.bf16 %v2820_v53, %v2820_v53 }
 0x4ce   : > { %2838 = vst.msk [vmem:[%s296_s21] sm:$0xf] %vm2837_vm7, %v2836_v8 }
 0x4cf   : > { %3414 = shalt.err (!%p3411_p2)
}
 0x4d0   : > { %s3415_s16 = scalar_lea.hbm %s4778_s18, 64  ;;  %s3419_s15 = scalar_lea.hbm %s4829_s7, 128 }
 0x4d1   : > { %p3416_p4 = scmp.ne.s32.totalorder %s4778_s18, %s3415_s16  ;;  %p3420_p9 = scmp.lt.u32.totalorder %s4778_s18, %s4829_s7 }
 0x4d2   : > { %p3421_p1 = scmp.lt.u32.totalorder %s3419_s15, %s3415_s16  ;;  %p3423_p6 = scmp.lt.u32.totalorder %s3415_s16, %s4778_s18 }
 0x4d3   : > { %p3417_p5 = pnand %p3416_p4, %p4860_p11 }
 0x4d4   : > { %p3422_p3 = por %p3421_p1, %p3420_p9 }
 0x4d5   : > { %p3418_p7 = pneg %p3417_p5 }
 0x4d6   : > { %p3424_p12 = por %p3423_p6, %p3422_p3 }
 0x4d8   : > { %p3425_p13 = pnand %p3424_p12, %p3418_p7 }
 0x4da   : > { %3428 = shalt.err (!%p3425_p13)
}
 0x4db   : > { %3203 = dma.vmem_to_hbm [thread:$0]  (%p4860_p11), %s4780_s9, 64, %s4778_s18, %s2840_s29  }
 0x4dc PF: > { %s2865_s8 = sand.u32 1, %s3455_s24   ;;  %p4861_p8 = scmp.ne.s32.totalorder %s4834_s14, 0 }
 0x4dd   : > { %p4862_p10 = scmp.ge.s32.totalorder %s3467_s27, 2  ;;  %s2866_s17 = scalar_lea.sflag [#allocation6], %s2865_s8 }
 0x4df   : > { %p3210_p0 = pnand %p4862_p10, %p4861_p8 }
 0x4e1   : > { %3450 = dma.done.wait (!%p3210_p0), %s2866_s17, 64  }
 0x4e2   : > { %3452 = vsyncadd (!%p3210_p0), %s2866_s17, 4294967232  ;;  %p20_p2 = scmp.ge.s32.totalorder %s3551_s30, 4   ;;  %s4863_s24 = smov %s3459_s25 }
 0x4e3   : > { %s4864_s25 = smov %s3463_s26  ;;  %s4865_s26 = smov %s3563_s10 }
 0x4e4   : > { %s4866_s27 = smov %s3551_s30  ;;  %22 = sbr.rel (!%p20_p2) target bundleno = 5 (0x5), region = 98 }
 0x4eb   :  { %2871 = vsyncpa [#allocation5], 1 }
 0x4ec   :  { %2873 = vsyncpa [#allocation5 + $0x1], 1 }
 0x4ed   :  { %2874 = vsyncpa [#allocation6], 1 }
 0x4ee   :  { %2876 = vsyncpa [#allocation6 + $0x1], 1 }

</bundles_post_ra>
